<compile_context>
chip_gen: v6e
topology: v6e:2x2x1
jax: 0.10.0
libtpu: 0.0.40
codegen_flags: <defaults>
</compile_context>

<pallas_src>
import math
import jax
import jax.numpy as jnp
from jax.experimental import pallas as pl
from jax.experimental.pallas import tpu as pltpu  # noqa: F401  (TPU backend assumed)

# ---- scaled-down BERT config (bert-base values in comments) ----
VOCAB = 64        # 30522
TYPE_VOCAB = 2    # 2
MAX_POS = 16      # 512
H = 32            # 768 hidden
NH = 4            # 12 heads
DH = H // NH
FF = 4 * H        # 3072 intermediate
LAYERS = 2        # 12 encoder layers
NUM_LABELS = 3    # use_three_labels = True
LN_EPS = 1e-12
DOUT = 0.1        # dropout prob; identity in eval/inference mode


def _gelu(x):
    # tanh approximation of BERT's erf-GELU (EUP-friendly on TPU).
    # TODO(synk): exact erf GELU would match PyTorch nn.GELU to ~1e-3 tighter.
    c = math.sqrt(2.0 / math.pi)
    return 0.5 * x * (1.0 + jnp.tanh(c * (x + 0.044715 * x * x * x)))


# ---------------------------------------------------------------------------
# Fused whole-forward Pallas kernel
# ---------------------------------------------------------------------------
def _bert_fused_kernel(emb_ref, mask_ref,
                       emb_ln_g_ref, emb_ln_b_ref,
                       qkv_w_ref, qkv_b_ref,
                       ao_w_ref, ao_b_ref,
                       attn_ln_g_ref, attn_ln_b_ref,
                       ff1_w_ref, ff1_b_ref,
                       ff2_w_ref, ff2_b_ref,
                       ff_ln_g_ref, ff_ln_b_ref,
                       pool_w_ref, pool_b_ref,
                       cls_w_ref, cls_b_ref,
                       out_ref):
    B, S = mask_ref.shape  # static

    def layernorm(h, g, b):
        mu = jnp.mean(h, axis=-1, keepdims=True)
        xc = h - mu
        var = jnp.mean(xc * xc, axis=-1, keepdims=True)
        return xc * jax.lax.rsqrt(var + LN_EPS) * g + b

    def dense(x, w, b):
        return jnp.dot(x, w, preferred_element_type=jnp.float32) + b

    # ---- embeddings LayerNorm (pure LN: no zero residual tensor) ----
    x = layernorm(emb_ref[...], emb_ln_g_ref[...], emb_ln_b_ref[...])   # (B*S, H)

    # ---- additive attention bias, built ONCE from the (B, S) mask:
    #      (B, 1, S), broadcast over query rows in every layer/head ----
    bias = ((1.0 - mask_ref[...]) * -10000.0)[:, None, :]

    scale = 1.0 / math.sqrt(DH)

    # ---- encoder layers (statically unrolled; weights indexed per layer) ----
    for l in range(LAYERS):
        # fused Q/K/V projection: one (B*S, H) @ (H, 3H) matmul
        qkv = dense(x, qkv_w_ref[l], qkv_b_ref[l])                      # (B*S, 3H)
        qkv3 = qkv.reshape(B, S, 3 * H)                                 # split leading dim only
        q3 = qkv3[:, :, 0 * H:1 * H] * scale                            # pre-scaled q
        k3 = qkv3[:, :, 1 * H:2 * H]
        v3 = qkv3[:, :, 2 * H:3 * H]

        # attention: batched over B via 3-D einsum; static loop over heads only
        head_outs = []
        for hd in range(NH):
            qh = q3[:, :, hd * DH:(hd + 1) * DH]                        # (B, S, DH)
            kh = k3[:, :, hd * DH:(hd + 1) * DH]
            vh = v3[:, :, hd * DH:(hd + 1) * DH]
            s = jnp.einsum('bqd,bkd->bqk', qh, kh,
                           preferred_element_type=jnp.float32) + bias   # (B, S, S)
            s = s - jnp.max(s, axis=-1, keepdims=True)
            p = jnp.exp(s)
            # softmax normalization on the EUP (approx reciprocal)
            p = p * pl.reciprocal(jnp.sum(p, axis=-1, keepdims=True),
                                  approx=True)
            head_outs.append(jnp.einsum('bqk,bkd->bqd', p, vh,
                                        preferred_element_type=jnp.float32))
        ctx = jnp.concatenate(head_outs, axis=-1).reshape(B * S, H)     # (B*S, H)

        # attention output projection + add & LayerNorm
        attn_out = dense(ctx, ao_w_ref[l], ao_b_ref[l])
        x = layernorm(attn_out + x, attn_ln_g_ref[l], attn_ln_b_ref[l])

        # feed-forward (GELU) + add & LayerNorm
        ff = _gelu(dense(x, ff1_w_ref[l], ff1_b_ref[l]))
        ff = dense(ff, ff2_w_ref[l], ff2_b_ref[l])
        x = layernorm(ff + x, ff_ln_g_ref[l], ff_ln_b_ref[l])

    # ---- pooler: [CLS] token of each sequence -> Linear + tanh ----
    cls_tok = jnp.concatenate([x[b * S:b * S + 1, :] for b in range(B)], axis=0)
    pooled = jnp.tanh(dense(cls_tok, pool_w_ref[...], pool_b_ref[...]))  # (B, H)

    # ---- Dropout(DOUT) == identity at inference; classifier head ----
    out_ref[...] = dense(pooled, cls_w_ref[...],
                         cls_b_ref[...]).astype(out_ref.dtype)


# ---------------------------------------------------------------------------
# Deterministic parameter init (synthetic stand-in for pretrained weights)
# ---------------------------------------------------------------------------
def init_params(key):
    std = 0.02

    def nrm(k, shape):
        return std * jax.random.normal(k, shape, dtype=jnp.float32)

    ks = jax.random.split(key, 10)
    return {
        "word_emb": nrm(ks[0], (VOCAB, H)),
        "pos_emb": nrm(ks[1], (MAX_POS, H)),
        "type_emb": nrm(ks[2], (TYPE_VOCAB, H)),
        "emb_ln_g": jnp.ones((1, H), jnp.float32),
        "emb_ln_b": jnp.zeros((1, H), jnp.float32),
        # fused QKV weights, stacked over layers
        "qkv_w": nrm(ks[3], (LAYERS, H, 3 * H)),
        "qkv_b": jnp.zeros((LAYERS, 1, 3 * H), jnp.float32),
        "ao_w": nrm(ks[4], (LAYERS, H, H)),
        "ao_b": jnp.zeros((LAYERS, 1, H), jnp.float32),
        "attn_ln_g": jnp.ones((LAYERS, 1, H), jnp.float32),
        "attn_ln_b": jnp.zeros((LAYERS, 1, H), jnp.float32),
        "ff1_w": nrm(ks[5], (LAYERS, H, FF)),
        "ff1_b": jnp.zeros((LAYERS, 1, FF), jnp.float32),
        "ff2_w": nrm(ks[6], (LAYERS, FF, H)),
        "ff2_b": jnp.zeros((LAYERS, 1, H), jnp.float32),
        "ff_ln_g": jnp.ones((LAYERS, 1, H), jnp.float32),
        "ff_ln_b": jnp.zeros((LAYERS, 1, H), jnp.float32),
        "pool_w": nrm(ks[7], (H, H)),
        "pool_b": jnp.zeros((1, H), jnp.float32),
        "cls_w": nrm(ks[8], (H, NUM_LABELS)),
        "cls_b": jnp.zeros((1, NUM_LABELS), jnp.float32),
    }


# ---------------------------------------------------------------------------
# Forward pass: embedding gather (glue) -> single fused Pallas kernel
# ---------------------------------------------------------------------------
def bert_class_forward(params, ids, mask, token_type_ids):
    B, S = ids.shape

    # embedding gathers are plain-JAX glue; everything else is in the kernel
    pos = jnp.arange(S)
    emb = (params["word_emb"][ids]
           + params["pos_emb"][pos][None, :, :]
           + params["type_emb"][token_type_ids])                       # (B, S, H)
    emb = emb.reshape(B * S, H).astype(jnp.float32)
    mask_f = mask.astype(jnp.float32)                                  # (B, S)

    logits = pl.pallas_call(
        _bert_fused_kernel,
        out_shape=jax.ShapeDtypeStruct((B, NUM_LABELS), jnp.float32),
        # no grid / no BlockSpecs: every operand is small and lives whole in
        # VMEM for the single fused invocation (one launch, zero intermediate
        # HBM traffic).
    )(emb, mask_f,
      params["emb_ln_g"], params["emb_ln_b"],
      params["qkv_w"], params["qkv_b"],
      params["ao_w"], params["ao_b"],
      params["attn_ln_g"], params["attn_ln_b"],
      params["ff1_w"], params["ff1_b"],
      params["ff2_w"], params["ff2_b"],
      params["ff_ln_g"], params["ff_ln_b"],
      params["pool_w"], params["pool_b"],
      params["cls_w"], params["cls_b"])
    return logits


if __name__ == "__main__":
    key = jax.random.PRNGKey(0)
    k_param, k_ids, k_tt = jax.random.split(key, 3)

    params = init_params(k_param)

    B, S = 2, 8
    ids = jax.random.randint(k_ids, (B, S), 0, VOCAB, dtype=jnp.int32)
    mask = jnp.ones((B, S), dtype=jnp.int32)
    token_type_ids = jax.random.randint(k_tt, (B, S), 0, TYPE_VOCAB, dtype=jnp.int32)

    fwd = jax.jit(bert_class_forward)
    logits = fwd(params, ids, mask, token_type_ids)
    jax.block_until_ready(logits)
    assert logits.shape == (B, NUM_LABELS)
    print("KERNEL_OK")
</pallas_src>

<mosaic_0001>
module attributes {stable_mosaic.version = 11 : i64} {
  func.func @_bert_fused_kernel(%arg0: memref<16x32xf32, #tpu.memory_space<vmem>>, %arg1: memref<2x8xf32, #tpu.memory_space<vmem>>, %arg2: memref<1x32xf32, #tpu.memory_space<vmem>>, %arg3: memref<1x32xf32, #tpu.memory_space<vmem>>, %arg4: memref<2x32x96xf32, #tpu.memory_space<vmem>>, %arg5: memref<2x1x96xf32, #tpu.memory_space<vmem>>, %arg6: memref<2x32x32xf32, #tpu.memory_space<vmem>>, %arg7: memref<2x1x32xf32, #tpu.memory_space<vmem>>, %arg8: memref<2x1x32xf32, #tpu.memory_space<vmem>>, %arg9: memref<2x1x32xf32, #tpu.memory_space<vmem>>, %arg10: memref<2x32x128xf32, #tpu.memory_space<vmem>>, %arg11: memref<2x1x128xf32, #tpu.memory_space<vmem>>, %arg12: memref<2x128x32xf32, #tpu.memory_space<vmem>>, %arg13: memref<2x1x32xf32, #tpu.memory_space<vmem>>, %arg14: memref<2x1x32xf32, #tpu.memory_space<vmem>>, %arg15: memref<2x1x32xf32, #tpu.memory_space<vmem>>, %arg16: memref<32x32xf32, #tpu.memory_space<vmem>>, %arg17: memref<1x32xf32, #tpu.memory_space<vmem>>, %arg18: memref<32x3xf32, #tpu.memory_space<vmem>>, %arg19: memref<1x3xf32, #tpu.memory_space<vmem>>, %arg20: memref<2x3xf32, #tpu.memory_space<vmem>>) attributes {dimension_semantics = [], scalar_prefetch = 0 : i64, scratch_operands = 0 : i64, tpu.core_type = #tpu.core_type<tc>} {
    %c0 = arith.constant 0 : index
    %c0_0 = arith.constant 0 : index
    %0 = vector.load %arg0[%c0, %c0_0] : memref<16x32xf32, #tpu.memory_space<vmem>>, vector<16x32xf32>
    %c0_1 = arith.constant 0 : index
    %c0_2 = arith.constant 0 : index
    %1 = vector.load %arg2[%c0_1, %c0_2] : memref<1x32xf32, #tpu.memory_space<vmem>>, vector<1x32xf32>
    %c0_3 = arith.constant 0 : index
    %c0_4 = arith.constant 0 : index
    %2 = vector.load %arg3[%c0_3, %c0_4] : memref<1x32xf32, #tpu.memory_space<vmem>>, vector<1x32xf32>
    %cst = arith.constant dense<0.000000e+00> : vector<16xf32>
    %3 = vector.multi_reduction <add>, %0, %cst [1] : vector<16x32xf32> to vector<16xf32>
    %4 = vector.shape_cast %3 : vector<16xf32> to vector<16x1xf32>
    %cst_5 = arith.constant 3.200000e+01 : f32
    %5 = vector.broadcast %cst_5 : f32 to vector<16x1xf32>
    %6 = arith.divf %4, %5 : vector<16x1xf32>
    %7 = vector.broadcast %6 : vector<16x1xf32> to vector<16x32xf32>
    %8 = arith.subf %0, %7 : vector<16x32xf32>
    %9 = arith.mulf %8, %8 : vector<16x32xf32>
    %cst_6 = arith.constant dense<0.000000e+00> : vector<16xf32>
    %10 = vector.multi_reduction <add>, %9, %cst_6 [1] : vector<16x32xf32> to vector<16xf32>
    %11 = vector.shape_cast %10 : vector<16xf32> to vector<16x1xf32>
    %cst_7 = arith.constant 3.200000e+01 : f32
    %12 = vector.broadcast %cst_7 : f32 to vector<16x1xf32>
    %13 = arith.divf %11, %12 : vector<16x1xf32>
    %cst_8 = arith.constant 9.99999996E-13 : f32
    %14 = vector.broadcast %cst_8 : f32 to vector<16x1xf32>
    %15 = arith.addf %13, %14 : vector<16x1xf32>
    %16 = math.rsqrt %15 : vector<16x1xf32>
    %17 = vector.broadcast %16 : vector<16x1xf32> to vector<16x32xf32>
    %18 = arith.mulf %8, %17 : vector<16x32xf32>
    %19 = vector.broadcast %1 : vector<1x32xf32> to vector<16x32xf32>
    %20 = arith.mulf %18, %19 : vector<16x32xf32>
    %21 = vector.broadcast %2 : vector<1x32xf32> to vector<16x32xf32>
    %22 = arith.addf %20, %21 : vector<16x32xf32>
    %c0_9 = arith.constant 0 : index
    %c0_10 = arith.constant 0 : index
    %23 = vector.load %arg1[%c0_9, %c0_10] : memref<2x8xf32, #tpu.memory_space<vmem>>, vector<2x8xf32>
    %cst_11 = arith.constant 1.000000e+00 : f32
    %24 = vector.broadcast %cst_11 : f32 to vector<2x8xf32>
    %25 = arith.subf %24, %23 : vector<2x8xf32>
    %cst_12 = arith.constant -1.000000e+04 : f32
    %26 = vector.broadcast %cst_12 : f32 to vector<2x8xf32>
    %27 = arith.mulf %25, %26 : vector<2x8xf32>
    %28 = vector.shape_cast %27 : vector<2x8xf32> to vector<2x1x8xf32>
    %c0_13 = arith.constant 0 : index
    %c0_14 = arith.constant 0 : index
    %c0_15 = arith.constant 0 : index
    %29 = vector.load %arg4[%c0_13, %c0_14, %c0_15] : memref<2x32x96xf32, #tpu.memory_space<vmem>>, vector<1x32x96xf32>
    %30 = vector.shape_cast %29 : vector<1x32x96xf32> to vector<32x96xf32>
    %c0_16 = arith.constant 0 : index
    %c0_17 = arith.constant 0 : index
    %c0_18 = arith.constant 0 : index
    %31 = vector.load %arg5[%c0_16, %c0_17, %c0_18] : memref<2x1x96xf32, #tpu.memory_space<vmem>>, vector<1x1x96xf32>
    %32 = vector.shape_cast %31 : vector<1x1x96xf32> to vector<1x96xf32>
    %cst_19 = arith.constant dense<0.000000e+00> : vector<16x96xf32>
    %33 = tpu.matmul %22, %30, %cst_19 {dimension_numbers = #tpu.dot_dimension_numbers<[1], [0], [0], [1], [0, 0, 1, 1], [], []>} : vector<16x32xf32>, vector<32x96xf32>, vector<16x96xf32> -> vector<16x96xf32>
    %34 = vector.broadcast %32 : vector<1x96xf32> to vector<16x96xf32>
    %35 = arith.addf %33, %34 : vector<16x96xf32>
    %36 = vector.shape_cast %35 : vector<16x96xf32> to vector<2x8x96xf32>
    %37 = vector.extract_strided_slice %36 {offsets = [0, 0, 0], sizes = [2, 8, 32], strides = [1, 1, 1]} : vector<2x8x96xf32> to vector<2x8x32xf32>
    %cst_20 = arith.constant 0.353553385 : f32
    %38 = vector.broadcast %cst_20 : f32 to vector<2x8x32xf32>
    %39 = arith.mulf %37, %38 : vector<2x8x32xf32>
    %40 = vector.extract_strided_slice %36 {offsets = [0, 0, 32], sizes = [2, 8, 32], strides = [1, 1, 1]} : vector<2x8x96xf32> to vector<2x8x32xf32>
    %41 = vector.extract_strided_slice %36 {offsets = [0, 0, 64], sizes = [2, 8, 32], strides = [1, 1, 1]} : vector<2x8x96xf32> to vector<2x8x32xf32>
    %42 = vector.extract_strided_slice %39 {offsets = [0, 0, 0], sizes = [2, 8, 8], strides = [1, 1, 1]} : vector<2x8x32xf32> to vector<2x8x8xf32>
    %43 = vector.extract_strided_slice %40 {offsets = [0, 0, 0], sizes = [2, 8, 8], strides = [1, 1, 1]} : vector<2x8x32xf32> to vector<2x8x8xf32>
    %44 = vector.extract_strided_slice %41 {offsets = [0, 0, 0], sizes = [2, 8, 8], strides = [1, 1, 1]} : vector<2x8x32xf32> to vector<2x8x8xf32>
    "tpu.trace_start"() <{level = 10 : i32, message = "bqd,bkd->bqk"}> : () -> ()
    %cst_21 = arith.constant dense<0.000000e+00> : vector<2x8x8xf32>
    %45 = tpu.matmul %42, %43, %cst_21 {dimension_numbers = #tpu.dot_dimension_numbers<[2], [2], [1], [1], [0, 0, 0, 1, 1, 1], [0], [0]>} : vector<2x8x8xf32>, vector<2x8x8xf32>, vector<2x8x8xf32> -> vector<2x8x8xf32>
    "tpu.trace_stop"() : () -> ()
    %46 = vector.broadcast %28 : vector<2x1x8xf32> to vector<2x8x8xf32>
    %47 = arith.addf %45, %46 : vector<2x8x8xf32>
    %cst_22 = arith.constant dense<0xFF800000> : vector<2x8xf32>
    %48 = vector.multi_reduction <maximumf>, %47, %cst_22 [2] : vector<2x8x8xf32> to vector<2x8xf32>
    %49 = vector.shape_cast %48 : vector<2x8xf32> to vector<2x8x1xf32>
    %50 = vector.broadcast %49 : vector<2x8x1xf32> to vector<2x8x8xf32>
    %51 = arith.subf %47, %50 : vector<2x8x8xf32>
    %52 = math.exp %51 : vector<2x8x8xf32>
    %cst_23 = arith.constant dense<0.000000e+00> : vector<2x8xf32>
    %53 = vector.multi_reduction <add>, %52, %cst_23 [2] : vector<2x8x8xf32> to vector<2x8xf32>
    %54 = vector.shape_cast %53 : vector<2x8xf32> to vector<2x8x1xf32>
    %55 = tpu.reciprocal %54 {approx = true} : vector<2x8x1xf32> -> vector<2x8x1xf32>
    %56 = vector.broadcast %55 : vector<2x8x1xf32> to vector<2x8x8xf32>
    %57 = arith.mulf %52, %56 : vector<2x8x8xf32>
    "tpu.trace_start"() <{level = 10 : i32, message = "bqk,bkd->bqd"}> : () -> ()
    %cst_24 = arith.constant dense<0.000000e+00> : vector<2x8x8xf32>
    %58 = tpu.matmul %57, %44, %cst_24 {dimension_numbers = #tpu.dot_dimension_numbers<[2], [1], [1], [2], [0, 0, 0, 1, 1, 2], [0], [0]>} : vector<2x8x8xf32>, vector<2x8x8xf32>, vector<2x8x8xf32> -> vector<2x8x8xf32>
    "tpu.trace_stop"() : () -> ()
    %59 = vector.extract_strided_slice %39 {offsets = [0, 0, 8], sizes = [2, 8, 8], strides = [1, 1, 1]} : vector<2x8x32xf32> to vector<2x8x8xf32>
    %60 = vector.extract_strided_slice %40 {offsets = [0, 0, 8], sizes = [2, 8, 8], strides = [1, 1, 1]} : vector<2x8x32xf32> to vector<2x8x8xf32>
    %61 = vector.extract_strided_slice %41 {offsets = [0, 0, 8], sizes = [2, 8, 8], strides = [1, 1, 1]} : vector<2x8x32xf32> to vector<2x8x8xf32>
    "tpu.trace_start"() <{level = 10 : i32, message = "bqd,bkd->bqk"}> : () -> ()
    %cst_25 = arith.constant dense<0.000000e+00> : vector<2x8x8xf32>
    %62 = tpu.matmul %59, %60, %cst_25 {dimension_numbers = #tpu.dot_dimension_numbers<[2], [2], [1], [1], [0, 0, 0, 1, 1, 1], [0], [0]>} : vector<2x8x8xf32>, vector<2x8x8xf32>, vector<2x8x8xf32> -> vector<2x8x8xf32>
    "tpu.trace_stop"() : () -> ()
    %63 = vector.broadcast %28 : vector<2x1x8xf32> to vector<2x8x8xf32>
    %64 = arith.addf %62, %63 : vector<2x8x8xf32>
    %cst_26 = arith.constant dense<0xFF800000> : vector<2x8xf32>
    %65 = vector.multi_reduction <maximumf>, %64, %cst_26 [2] : vector<2x8x8xf32> to vector<2x8xf32>
    %66 = vector.shape_cast %65 : vector<2x8xf32> to vector<2x8x1xf32>
    %67 = vector.broadcast %66 : vector<2x8x1xf32> to vector<2x8x8xf32>
    %68 = arith.subf %64, %67 : vector<2x8x8xf32>
    %69 = math.exp %68 : vector<2x8x8xf32>
    %cst_27 = arith.constant dense<0.000000e+00> : vector<2x8xf32>
    %70 = vector.multi_reduction <add>, %69, %cst_27 [2] : vector<2x8x8xf32> to vector<2x8xf32>
    %71 = vector.shape_cast %70 : vector<2x8xf32> to vector<2x8x1xf32>
    %72 = tpu.reciprocal %71 {approx = true} : vector<2x8x1xf32> -> vector<2x8x1xf32>
    %73 = vector.broadcast %72 : vector<2x8x1xf32> to vector<2x8x8xf32>
    %74 = arith.mulf %69, %73 : vector<2x8x8xf32>
    "tpu.trace_start"() <{level = 10 : i32, message = "bqk,bkd->bqd"}> : () -> ()
    %cst_28 = arith.constant dense<0.000000e+00> : vector<2x8x8xf32>
    %75 = tpu.matmul %74, %61, %cst_28 {dimension_numbers = #tpu.dot_dimension_numbers<[2], [1], [1], [2], [0, 0, 0, 1, 1, 2], [0], [0]>} : vector<2x8x8xf32>, vector<2x8x8xf32>, vector<2x8x8xf32> -> vector<2x8x8xf32>
    "tpu.trace_stop"() : () -> ()
    %76 = vector.extract_strided_slice %39 {offsets = [0, 0, 16], sizes = [2, 8, 8], strides = [1, 1, 1]} : vector<2x8x32xf32> to vector<2x8x8xf32>
    %77 = vector.extract_strided_slice %40 {offsets = [0, 0, 16], sizes = [2, 8, 8], strides = [1, 1, 1]} : vector<2x8x32xf32> to vector<2x8x8xf32>
    %78 = vector.extract_strided_slice %41 {offsets = [0, 0, 16], sizes = [2, 8, 8], strides = [1, 1, 1]} : vector<2x8x32xf32> to vector<2x8x8xf32>
    "tpu.trace_start"() <{level = 10 : i32, message = "bqd,bkd->bqk"}> : () -> ()
    %cst_29 = arith.constant dense<0.000000e+00> : vector<2x8x8xf32>
    %79 = tpu.matmul %76, %77, %cst_29 {dimension_numbers = #tpu.dot_dimension_numbers<[2], [2], [1], [1], [0, 0, 0, 1, 1, 1], [0], [0]>} : vector<2x8x8xf32>, vector<2x8x8xf32>, vector<2x8x8xf32> -> vector<2x8x8xf32>
    "tpu.trace_stop"() : () -> ()
    %80 = vector.broadcast %28 : vector<2x1x8xf32> to vector<2x8x8xf32>
    %81 = arith.addf %79, %80 : vector<2x8x8xf32>
    %cst_30 = arith.constant dense<0xFF800000> : vector<2x8xf32>
    %82 = vector.multi_reduction <maximumf>, %81, %cst_30 [2] : vector<2x8x8xf32> to vector<2x8xf32>
    %83 = vector.shape_cast %82 : vector<2x8xf32> to vector<2x8x1xf32>
    %84 = vector.broadcast %83 : vector<2x8x1xf32> to vector<2x8x8xf32>
    %85 = arith.subf %81, %84 : vector<2x8x8xf32>
    %86 = math.exp %85 : vector<2x8x8xf32>
    %cst_31 = arith.constant dense<0.000000e+00> : vector<2x8xf32>
    %87 = vector.multi_reduction <add>, %86, %cst_31 [2] : vector<2x8x8xf32> to vector<2x8xf32>
    %88 = vector.shape_cast %87 : vector<2x8xf32> to vector<2x8x1xf32>
    %89 = tpu.reciprocal %88 {approx = true} : vector<2x8x1xf32> -> vector<2x8x1xf32>
    %90 = vector.broadcast %89 : vector<2x8x1xf32> to vector<2x8x8xf32>
    %91 = arith.mulf %86, %90 : vector<2x8x8xf32>
    "tpu.trace_start"() <{level = 10 : i32, message = "bqk,bkd->bqd"}> : () -> ()
    %cst_32 = arith.constant dense<0.000000e+00> : vector<2x8x8xf32>
    %92 = tpu.matmul %91, %78, %cst_32 {dimension_numbers = #tpu.dot_dimension_numbers<[2], [1], [1], [2], [0, 0, 0, 1, 1, 2], [0], [0]>} : vector<2x8x8xf32>, vector<2x8x8xf32>, vector<2x8x8xf32> -> vector<2x8x8xf32>
    "tpu.trace_stop"() : () -> ()
    %93 = vector.extract_strided_slice %39 {offsets = [0, 0, 24], sizes = [2, 8, 8], strides = [1, 1, 1]} : vector<2x8x32xf32> to vector<2x8x8xf32>
    %94 = vector.extract_strided_slice %40 {offsets = [0, 0, 24], sizes = [2, 8, 8], strides = [1, 1, 1]} : vector<2x8x32xf32> to vector<2x8x8xf32>
    %95 = vector.extract_strided_slice %41 {offsets = [0, 0, 24], sizes = [2, 8, 8], strides = [1, 1, 1]} : vector<2x8x32xf32> to vector<2x8x8xf32>
    "tpu.trace_start"() <{level = 10 : i32, message = "bqd,bkd->bqk"}> : () -> ()
    %cst_33 = arith.constant dense<0.000000e+00> : vector<2x8x8xf32>
    %96 = tpu.matmul %93, %94, %cst_33 {dimension_numbers = #tpu.dot_dimension_numbers<[2], [2], [1], [1], [0, 0, 0, 1, 1, 1], [0], [0]>} : vector<2x8x8xf32>, vector<2x8x8xf32>, vector<2x8x8xf32> -> vector<2x8x8xf32>
    "tpu.trace_stop"() : () -> ()
    %97 = vector.broadcast %28 : vector<2x1x8xf32> to vector<2x8x8xf32>
    %98 = arith.addf %96, %97 : vector<2x8x8xf32>
    %cst_34 = arith.constant dense<0xFF800000> : vector<2x8xf32>
    %99 = vector.multi_reduction <maximumf>, %98, %cst_34 [2] : vector<2x8x8xf32> to vector<2x8xf32>
    %100 = vector.shape_cast %99 : vector<2x8xf32> to vector<2x8x1xf32>
    %101 = vector.broadcast %100 : vector<2x8x1xf32> to vector<2x8x8xf32>
    %102 = arith.subf %98, %101 : vector<2x8x8xf32>
    %103 = math.exp %102 : vector<2x8x8xf32>
    %cst_35 = arith.constant dense<0.000000e+00> : vector<2x8xf32>
    %104 = vector.multi_reduction <add>, %103, %cst_35 [2] : vector<2x8x8xf32> to vector<2x8xf32>
    %105 = vector.shape_cast %104 : vector<2x8xf32> to vector<2x8x1xf32>
    %106 = tpu.reciprocal %105 {approx = true} : vector<2x8x1xf32> -> vector<2x8x1xf32>
    %107 = vector.broadcast %106 : vector<2x8x1xf32> to vector<2x8x8xf32>
    %108 = arith.mulf %103, %107 : vector<2x8x8xf32>
    "tpu.trace_start"() <{level = 10 : i32, message = "bqk,bkd->bqd"}> : () -> ()
    %cst_36 = arith.constant dense<0.000000e+00> : vector<2x8x8xf32>
    %109 = tpu.matmul %108, %95, %cst_36 {dimension_numbers = #tpu.dot_dimension_numbers<[2], [1], [1], [2], [0, 0, 0, 1, 1, 2], [0], [0]>} : vector<2x8x8xf32>, vector<2x8x8xf32>, vector<2x8x8xf32> -> vector<2x8x8xf32>
    "tpu.trace_stop"() : () -> ()
    %110 = tpu.concatenate %58, %75, %92, %109 in 2 : vector<2x8x8xf32>, vector<2x8x8xf32>, vector<2x8x8xf32>, vector<2x8x8xf32> -> vector<2x8x32xf32>
    %111 = vector.shape_cast %110 : vector<2x8x32xf32> to vector<16x32xf32>
    %c0_37 = arith.constant 0 : index
    %c0_38 = arith.constant 0 : index
    %c0_39 = arith.constant 0 : index
    %112 = vector.load %arg6[%c0_37, %c0_38, %c0_39] : memref<2x32x32xf32, #tpu.memory_space<vmem>>, vector<1x32x32xf32>
    %113 = vector.shape_cast %112 : vector<1x32x32xf32> to vector<32x32xf32>
    %c0_40 = arith.constant 0 : index
    %c0_41 = arith.constant 0 : index
    %c0_42 = arith.constant 0 : index
    %114 = vector.load %arg7[%c0_40, %c0_41, %c0_42] : memref<2x1x32xf32, #tpu.memory_space<vmem>>, vector<1x1x32xf32>
    %115 = vector.shape_cast %114 : vector<1x1x32xf32> to vector<1x32xf32>
    %cst_43 = arith.constant dense<0.000000e+00> : vector<16x32xf32>
    %116 = tpu.matmul %111, %113, %cst_43 {dimension_numbers = #tpu.dot_dimension_numbers<[1], [0], [0], [1], [0, 0, 1, 1], [], []>} : vector<16x32xf32>, vector<32x32xf32>, vector<16x32xf32> -> vector<16x32xf32>
    %117 = vector.broadcast %115 : vector<1x32xf32> to vector<16x32xf32>
    %118 = arith.addf %116, %117 : vector<16x32xf32>
    %119 = arith.addf %118, %22 : vector<16x32xf32>
    %c0_44 = arith.constant 0 : index
    %c0_45 = arith.constant 0 : index
    %c0_46 = arith.constant 0 : index
    %120 = vector.load %arg8[%c0_44, %c0_45, %c0_46] : memref<2x1x32xf32, #tpu.memory_space<vmem>>, vector<1x1x32xf32>
    %121 = vector.shape_cast %120 : vector<1x1x32xf32> to vector<1x32xf32>
    %c0_47 = arith.constant 0 : index
    %c0_48 = arith.constant 0 : index
    %c0_49 = arith.constant 0 : index
    %122 = vector.load %arg9[%c0_47, %c0_48, %c0_49] : memref<2x1x32xf32, #tpu.memory_space<vmem>>, vector<1x1x32xf32>
    %123 = vector.shape_cast %122 : vector<1x1x32xf32> to vector<1x32xf32>
    %cst_50 = arith.constant dense<0.000000e+00> : vector<16xf32>
    %124 = vector.multi_reduction <add>, %119, %cst_50 [1] : vector<16x32xf32> to vector<16xf32>
    %125 = vector.shape_cast %124 : vector<16xf32> to vector<16x1xf32>
    %cst_51 = arith.constant 3.200000e+01 : f32
    %126 = vector.broadcast %cst_51 : f32 to vector<16x1xf32>
    %127 = arith.divf %125, %126 : vector<16x1xf32>
    %128 = vector.broadcast %127 : vector<16x1xf32> to vector<16x32xf32>
    %129 = arith.subf %119, %128 : vector<16x32xf32>
    %130 = arith.mulf %129, %129 : vector<16x32xf32>
    %cst_52 = arith.constant dense<0.000000e+00> : vector<16xf32>
    %131 = vector.multi_reduction <add>, %130, %cst_52 [1] : vector<16x32xf32> to vector<16xf32>
    %132 = vector.shape_cast %131 : vector<16xf32> to vector<16x1xf32>
    %cst_53 = arith.constant 3.200000e+01 : f32
    %133 = vector.broadcast %cst_53 : f32 to vector<16x1xf32>
    %134 = arith.divf %132, %133 : vector<16x1xf32>
    %cst_54 = arith.constant 9.99999996E-13 : f32
    %135 = vector.broadcast %cst_54 : f32 to vector<16x1xf32>
    %136 = arith.addf %134, %135 : vector<16x1xf32>
    %137 = math.rsqrt %136 : vector<16x1xf32>
    %138 = vector.broadcast %137 : vector<16x1xf32> to vector<16x32xf32>
    %139 = arith.mulf %129, %138 : vector<16x32xf32>
    %140 = vector.broadcast %121 : vector<1x32xf32> to vector<16x32xf32>
    %141 = arith.mulf %139, %140 : vector<16x32xf32>
    %142 = vector.broadcast %123 : vector<1x32xf32> to vector<16x32xf32>
    %143 = arith.addf %141, %142 : vector<16x32xf32>
    %c0_55 = arith.constant 0 : index
    %c0_56 = arith.constant 0 : index
    %c0_57 = arith.constant 0 : index
    %144 = vector.load %arg10[%c0_55, %c0_56, %c0_57] : memref<2x32x128xf32, #tpu.memory_space<vmem>>, vector<1x32x128xf32>
    %145 = vector.shape_cast %144 : vector<1x32x128xf32> to vector<32x128xf32>
    %c0_58 = arith.constant 0 : index
    %c0_59 = arith.constant 0 : index
    %c0_60 = arith.constant 0 : index
    %146 = vector.load %arg11[%c0_58, %c0_59, %c0_60] : memref<2x1x128xf32, #tpu.memory_space<vmem>>, vector<1x1x128xf32>
    %147 = vector.shape_cast %146 : vector<1x1x128xf32> to vector<1x128xf32>
    %cst_61 = arith.constant dense<0.000000e+00> : vector<16x128xf32>
    %148 = tpu.matmul %143, %145, %cst_61 {dimension_numbers = #tpu.dot_dimension_numbers<[1], [0], [0], [1], [0, 0, 1, 1], [], []>} : vector<16x32xf32>, vector<32x128xf32>, vector<16x128xf32> -> vector<16x128xf32>
    %149 = vector.broadcast %147 : vector<1x128xf32> to vector<16x128xf32>
    %150 = arith.addf %148, %149 : vector<16x128xf32>
    %cst_62 = arith.constant 5.000000e-01 : f32
    %151 = vector.broadcast %cst_62 : f32 to vector<16x128xf32>
    %152 = arith.mulf %151, %150 : vector<16x128xf32>
    %cst_63 = arith.constant 4.471500e-02 : f32
    %153 = vector.broadcast %cst_63 : f32 to vector<16x128xf32>
    %154 = arith.mulf %153, %150 : vector<16x128xf32>
    %155 = arith.mulf %154, %150 : vector<16x128xf32>
    %156 = arith.mulf %155, %150 : vector<16x128xf32>
    %157 = arith.addf %150, %156 : vector<16x128xf32>
    %cst_64 = arith.constant 0.797884583 : f32
    %158 = vector.broadcast %cst_64 : f32 to vector<16x128xf32>
    %159 = arith.mulf %158, %157 : vector<16x128xf32>
    %160 = math.tanh %159 : vector<16x128xf32>
    %cst_65 = arith.constant 1.000000e+00 : f32
    %161 = vector.broadcast %cst_65 : f32 to vector<16x128xf32>
    %162 = arith.addf %161, %160 : vector<16x128xf32>
    %163 = arith.mulf %152, %162 : vector<16x128xf32>
    %c0_66 = arith.constant 0 : index
    %c0_67 = arith.constant 0 : index
    %c0_68 = arith.constant 0 : index
    %164 = vector.load %arg12[%c0_66, %c0_67, %c0_68] : memref<2x128x32xf32, #tpu.memory_space<vmem>>, vector<1x128x32xf32>
    %165 = vector.shape_cast %164 : vector<1x128x32xf32> to vector<128x32xf32>
    %c0_69 = arith.constant 0 : index
    %c0_70 = arith.constant 0 : index
    %c0_71 = arith.constant 0 : index
    %166 = vector.load %arg13[%c0_69, %c0_70, %c0_71] : memref<2x1x32xf32, #tpu.memory_space<vmem>>, vector<1x1x32xf32>
    %167 = vector.shape_cast %166 : vector<1x1x32xf32> to vector<1x32xf32>
    %cst_72 = arith.constant dense<0.000000e+00> : vector<16x32xf32>
    %168 = tpu.matmul %163, %165, %cst_72 {dimension_numbers = #tpu.dot_dimension_numbers<[1], [0], [0], [1], [0, 0, 1, 1], [], []>} : vector<16x128xf32>, vector<128x32xf32>, vector<16x32xf32> -> vector<16x32xf32>
    %169 = vector.broadcast %167 : vector<1x32xf32> to vector<16x32xf32>
    %170 = arith.addf %168, %169 : vector<16x32xf32>
    %171 = arith.addf %170, %143 : vector<16x32xf32>
    %c0_73 = arith.constant 0 : index
    %c0_74 = arith.constant 0 : index
    %c0_75 = arith.constant 0 : index
    %172 = vector.load %arg14[%c0_73, %c0_74, %c0_75] : memref<2x1x32xf32, #tpu.memory_space<vmem>>, vector<1x1x32xf32>
    %173 = vector.shape_cast %172 : vector<1x1x32xf32> to vector<1x32xf32>
    %c0_76 = arith.constant 0 : index
    %c0_77 = arith.constant 0 : index
    %c0_78 = arith.constant 0 : index
    %174 = vector.load %arg15[%c0_76, %c0_77, %c0_78] : memref<2x1x32xf32, #tpu.memory_space<vmem>>, vector<1x1x32xf32>
    %175 = vector.shape_cast %174 : vector<1x1x32xf32> to vector<1x32xf32>
    %cst_79 = arith.constant dense<0.000000e+00> : vector<16xf32>
    %176 = vector.multi_reduction <add>, %171, %cst_79 [1] : vector<16x32xf32> to vector<16xf32>
    %177 = vector.shape_cast %176 : vector<16xf32> to vector<16x1xf32>
    %cst_80 = arith.constant 3.200000e+01 : f32
    %178 = vector.broadcast %cst_80 : f32 to vector<16x1xf32>
    %179 = arith.divf %177, %178 : vector<16x1xf32>
    %180 = vector.broadcast %179 : vector<16x1xf32> to vector<16x32xf32>
    %181 = arith.subf %171, %180 : vector<16x32xf32>
    %182 = arith.mulf %181, %181 : vector<16x32xf32>
    %cst_81 = arith.constant dense<0.000000e+00> : vector<16xf32>
    %183 = vector.multi_reduction <add>, %182, %cst_81 [1] : vector<16x32xf32> to vector<16xf32>
    %184 = vector.shape_cast %183 : vector<16xf32> to vector<16x1xf32>
    %cst_82 = arith.constant 3.200000e+01 : f32
    %185 = vector.broadcast %cst_82 : f32 to vector<16x1xf32>
    %186 = arith.divf %184, %185 : vector<16x1xf32>
    %cst_83 = arith.constant 9.99999996E-13 : f32
    %187 = vector.broadcast %cst_83 : f32 to vector<16x1xf32>
    %188 = arith.addf %186, %187 : vector<16x1xf32>
    %189 = math.rsqrt %188 : vector<16x1xf32>
    %190 = vector.broadcast %189 : vector<16x1xf32> to vector<16x32xf32>
    %191 = arith.mulf %181, %190 : vector<16x32xf32>
    %192 = vector.broadcast %173 : vector<1x32xf32> to vector<16x32xf32>
    %193 = arith.mulf %191, %192 : vector<16x32xf32>
    %194 = vector.broadcast %175 : vector<1x32xf32> to vector<16x32xf32>
    %195 = arith.addf %193, %194 : vector<16x32xf32>
    %c1 = arith.constant 1 : index
    %c0_84 = arith.constant 0 : index
    %c0_85 = arith.constant 0 : index
    %196 = vector.load %arg4[%c1, %c0_84, %c0_85] : memref<2x32x96xf32, #tpu.memory_space<vmem>>, vector<1x32x96xf32>
    %197 = vector.shape_cast %196 : vector<1x32x96xf32> to vector<32x96xf32>
    %c1_86 = arith.constant 1 : index
    %c0_87 = arith.constant 0 : index
    %c0_88 = arith.constant 0 : index
    %198 = vector.load %arg5[%c1_86, %c0_87, %c0_88] : memref<2x1x96xf32, #tpu.memory_space<vmem>>, vector<1x1x96xf32>
    %199 = vector.shape_cast %198 : vector<1x1x96xf32> to vector<1x96xf32>
    %cst_89 = arith.constant dense<0.000000e+00> : vector<16x96xf32>
    %200 = tpu.matmul %195, %197, %cst_89 {dimension_numbers = #tpu.dot_dimension_numbers<[1], [0], [0], [1], [0, 0, 1, 1], [], []>} : vector<16x32xf32>, vector<32x96xf32>, vector<16x96xf32> -> vector<16x96xf32>
    %201 = vector.broadcast %199 : vector<1x96xf32> to vector<16x96xf32>
    %202 = arith.addf %200, %201 : vector<16x96xf32>
    %203 = vector.shape_cast %202 : vector<16x96xf32> to vector<2x8x96xf32>
    %204 = vector.extract_strided_slice %203 {offsets = [0, 0, 0], sizes = [2, 8, 32], strides = [1, 1, 1]} : vector<2x8x96xf32> to vector<2x8x32xf32>
    %cst_90 = arith.constant 0.353553385 : f32
    %205 = vector.broadcast %cst_90 : f32 to vector<2x8x32xf32>
    %206 = arith.mulf %204, %205 : vector<2x8x32xf32>
    %207 = vector.extract_strided_slice %203 {offsets = [0, 0, 32], sizes = [2, 8, 32], strides = [1, 1, 1]} : vector<2x8x96xf32> to vector<2x8x32xf32>
    %208 = vector.extract_strided_slice %203 {offsets = [0, 0, 64], sizes = [2, 8, 32], strides = [1, 1, 1]} : vector<2x8x96xf32> to vector<2x8x32xf32>
    %209 = vector.extract_strided_slice %206 {offsets = [0, 0, 0], sizes = [2, 8, 8], strides = [1, 1, 1]} : vector<2x8x32xf32> to vector<2x8x8xf32>
    %210 = vector.extract_strided_slice %207 {offsets = [0, 0, 0], sizes = [2, 8, 8], strides = [1, 1, 1]} : vector<2x8x32xf32> to vector<2x8x8xf32>
    %211 = vector.extract_strided_slice %208 {offsets = [0, 0, 0], sizes = [2, 8, 8], strides = [1, 1, 1]} : vector<2x8x32xf32> to vector<2x8x8xf32>
    "tpu.trace_start"() <{level = 10 : i32, message = "bqd,bkd->bqk"}> : () -> ()
    %cst_91 = arith.constant dense<0.000000e+00> : vector<2x8x8xf32>
    %212 = tpu.matmul %209, %210, %cst_91 {dimension_numbers = #tpu.dot_dimension_numbers<[2], [2], [1], [1], [0, 0, 0, 1, 1, 1], [0], [0]>} : vector<2x8x8xf32>, vector<2x8x8xf32>, vector<2x8x8xf32> -> vector<2x8x8xf32>
    "tpu.trace_stop"() : () -> ()
    %213 = vector.broadcast %28 : vector<2x1x8xf32> to vector<2x8x8xf32>
    %214 = arith.addf %212, %213 : vector<2x8x8xf32>
    %cst_92 = arith.constant dense<0xFF800000> : vector<2x8xf32>
    %215 = vector.multi_reduction <maximumf>, %214, %cst_92 [2] : vector<2x8x8xf32> to vector<2x8xf32>
    %216 = vector.shape_cast %215 : vector<2x8xf32> to vector<2x8x1xf32>
    %217 = vector.broadcast %216 : vector<2x8x1xf32> to vector<2x8x8xf32>
    %218 = arith.subf %214, %217 : vector<2x8x8xf32>
    %219 = math.exp %218 : vector<2x8x8xf32>
    %cst_93 = arith.constant dense<0.000000e+00> : vector<2x8xf32>
    %220 = vector.multi_reduction <add>, %219, %cst_93 [2] : vector<2x8x8xf32> to vector<2x8xf32>
    %221 = vector.shape_cast %220 : vector<2x8xf32> to vector<2x8x1xf32>
    %222 = tpu.reciprocal %221 {approx = true} : vector<2x8x1xf32> -> vector<2x8x1xf32>
    %223 = vector.broadcast %222 : vector<2x8x1xf32> to vector<2x8x8xf32>
    %224 = arith.mulf %219, %223 : vector<2x8x8xf32>
    "tpu.trace_start"() <{level = 10 : i32, message = "bqk,bkd->bqd"}> : () -> ()
    %cst_94 = arith.constant dense<0.000000e+00> : vector<2x8x8xf32>
    %225 = tpu.matmul %224, %211, %cst_94 {dimension_numbers = #tpu.dot_dimension_numbers<[2], [1], [1], [2], [0, 0, 0, 1, 1, 2], [0], [0]>} : vector<2x8x8xf32>, vector<2x8x8xf32>, vector<2x8x8xf32> -> vector<2x8x8xf32>
    "tpu.trace_stop"() : () -> ()
    %226 = vector.extract_strided_slice %206 {offsets = [0, 0, 8], sizes = [2, 8, 8], strides = [1, 1, 1]} : vector<2x8x32xf32> to vector<2x8x8xf32>
    %227 = vector.extract_strided_slice %207 {offsets = [0, 0, 8], sizes = [2, 8, 8], strides = [1, 1, 1]} : vector<2x8x32xf32> to vector<2x8x8xf32>
    %228 = vector.extract_strided_slice %208 {offsets = [0, 0, 8], sizes = [2, 8, 8], strides = [1, 1, 1]} : vector<2x8x32xf32> to vector<2x8x8xf32>
    "tpu.trace_start"() <{level = 10 : i32, message = "bqd,bkd->bqk"}> : () -> ()
    %cst_95 = arith.constant dense<0.000000e+00> : vector<2x8x8xf32>
    %229 = tpu.matmul %226, %227, %cst_95 {dimension_numbers = #tpu.dot_dimension_numbers<[2], [2], [1], [1], [0, 0, 0, 1, 1, 1], [0], [0]>} : vector<2x8x8xf32>, vector<2x8x8xf32>, vector<2x8x8xf32> -> vector<2x8x8xf32>
    "tpu.trace_stop"() : () -> ()
    %230 = vector.broadcast %28 : vector<2x1x8xf32> to vector<2x8x8xf32>
    %231 = arith.addf %229, %230 : vector<2x8x8xf32>
    %cst_96 = arith.constant dense<0xFF800000> : vector<2x8xf32>
    %232 = vector.multi_reduction <maximumf>, %231, %cst_96 [2] : vector<2x8x8xf32> to vector<2x8xf32>
    %233 = vector.shape_cast %232 : vector<2x8xf32> to vector<2x8x1xf32>
    %234 = vector.broadcast %233 : vector<2x8x1xf32> to vector<2x8x8xf32>
    %235 = arith.subf %231, %234 : vector<2x8x8xf32>
    %236 = math.exp %235 : vector<2x8x8xf32>
    %cst_97 = arith.constant dense<0.000000e+00> : vector<2x8xf32>
    %237 = vector.multi_reduction <add>, %236, %cst_97 [2] : vector<2x8x8xf32> to vector<2x8xf32>
    %238 = vector.shape_cast %237 : vector<2x8xf32> to vector<2x8x1xf32>
    %239 = tpu.reciprocal %238 {approx = true} : vector<2x8x1xf32> -> vector<2x8x1xf32>
    %240 = vector.broadcast %239 : vector<2x8x1xf32> to vector<2x8x8xf32>
    %241 = arith.mulf %236, %240 : vector<2x8x8xf32>
    "tpu.trace_start"() <{level = 10 : i32, message = "bqk,bkd->bqd"}> : () -> ()
    %cst_98 = arith.constant dense<0.000000e+00> : vector<2x8x8xf32>
    %242 = tpu.matmul %241, %228, %cst_98 {dimension_numbers = #tpu.dot_dimension_numbers<[2], [1], [1], [2], [0, 0, 0, 1, 1, 2], [0], [0]>} : vector<2x8x8xf32>, vector<2x8x8xf32>, vector<2x8x8xf32> -> vector<2x8x8xf32>
    "tpu.trace_stop"() : () -> ()
    %243 = vector.extract_strided_slice %206 {offsets = [0, 0, 16], sizes = [2, 8, 8], strides = [1, 1, 1]} : vector<2x8x32xf32> to vector<2x8x8xf32>
    %244 = vector.extract_strided_slice %207 {offsets = [0, 0, 16], sizes = [2, 8, 8], strides = [1, 1, 1]} : vector<2x8x32xf32> to vector<2x8x8xf32>
    %245 = vector.extract_strided_slice %208 {offsets = [0, 0, 16], sizes = [2, 8, 8], strides = [1, 1, 1]} : vector<2x8x32xf32> to vector<2x8x8xf32>
    "tpu.trace_start"() <{level = 10 : i32, message = "bqd,bkd->bqk"}> : () -> ()
    %cst_99 = arith.constant dense<0.000000e+00> : vector<2x8x8xf32>
    %246 = tpu.matmul %243, %244, %cst_99 {dimension_numbers = #tpu.dot_dimension_numbers<[2], [2], [1], [1], [0, 0, 0, 1, 1, 1], [0], [0]>} : vector<2x8x8xf32>, vector<2x8x8xf32>, vector<2x8x8xf32> -> vector<2x8x8xf32>
    "tpu.trace_stop"() : () -> ()
    %247 = vector.broadcast %28 : vector<2x1x8xf32> to vector<2x8x8xf32>
    %248 = arith.addf %246, %247 : vector<2x8x8xf32>
    %cst_100 = arith.constant dense<0xFF800000> : vector<2x8xf32>
    %249 = vector.multi_reduction <maximumf>, %248, %cst_100 [2] : vector<2x8x8xf32> to vector<2x8xf32>
    %250 = vector.shape_cast %249 : vector<2x8xf32> to vector<2x8x1xf32>
    %251 = vector.broadcast %250 : vector<2x8x1xf32> to vector<2x8x8xf32>
    %252 = arith.subf %248, %251 : vector<2x8x8xf32>
    %253 = math.exp %252 : vector<2x8x8xf32>
    %cst_101 = arith.constant dense<0.000000e+00> : vector<2x8xf32>
    %254 = vector.multi_reduction <add>, %253, %cst_101 [2] : vector<2x8x8xf32> to vector<2x8xf32>
    %255 = vector.shape_cast %254 : vector<2x8xf32> to vector<2x8x1xf32>
    %256 = tpu.reciprocal %255 {approx = true} : vector<2x8x1xf32> -> vector<2x8x1xf32>
    %257 = vector.broadcast %256 : vector<2x8x1xf32> to vector<2x8x8xf32>
    %258 = arith.mulf %253, %257 : vector<2x8x8xf32>
    "tpu.trace_start"() <{level = 10 : i32, message = "bqk,bkd->bqd"}> : () -> ()
    %cst_102 = arith.constant dense<0.000000e+00> : vector<2x8x8xf32>
    %259 = tpu.matmul %258, %245, %cst_102 {dimension_numbers = #tpu.dot_dimension_numbers<[2], [1], [1], [2], [0, 0, 0, 1, 1, 2], [0], [0]>} : vector<2x8x8xf32>, vector<2x8x8xf32>, vector<2x8x8xf32> -> vector<2x8x8xf32>
    "tpu.trace_stop"() : () -> ()
    %260 = vector.extract_strided_slice %206 {offsets = [0, 0, 24], sizes = [2, 8, 8], strides = [1, 1, 1]} : vector<2x8x32xf32> to vector<2x8x8xf32>
    %261 = vector.extract_strided_slice %207 {offsets = [0, 0, 24], sizes = [2, 8, 8], strides = [1, 1, 1]} : vector<2x8x32xf32> to vector<2x8x8xf32>
    %262 = vector.extract_strided_slice %208 {offsets = [0, 0, 24], sizes = [2, 8, 8], strides = [1, 1, 1]} : vector<2x8x32xf32> to vector<2x8x8xf32>
    "tpu.trace_start"() <{level = 10 : i32, message = "bqd,bkd->bqk"}> : () -> ()
    %cst_103 = arith.constant dense<0.000000e+00> : vector<2x8x8xf32>
    %263 = tpu.matmul %260, %261, %cst_103 {dimension_numbers = #tpu.dot_dimension_numbers<[2], [2], [1], [1], [0, 0, 0, 1, 1, 1], [0], [0]>} : vector<2x8x8xf32>, vector<2x8x8xf32>, vector<2x8x8xf32> -> vector<2x8x8xf32>
    "tpu.trace_stop"() : () -> ()
    %264 = vector.broadcast %28 : vector<2x1x8xf32> to vector<2x8x8xf32>
    %265 = arith.addf %263, %264 : vector<2x8x8xf32>
    %cst_104 = arith.constant dense<0xFF800000> : vector<2x8xf32>
    %266 = vector.multi_reduction <maximumf>, %265, %cst_104 [2] : vector<2x8x8xf32> to vector<2x8xf32>
    %267 = vector.shape_cast %266 : vector<2x8xf32> to vector<2x8x1xf32>
    %268 = vector.broadcast %267 : vector<2x8x1xf32> to vector<2x8x8xf32>
    %269 = arith.subf %265, %268 : vector<2x8x8xf32>
    %270 = math.exp %269 : vector<2x8x8xf32>
    %cst_105 = arith.constant dense<0.000000e+00> : vector<2x8xf32>
    %271 = vector.multi_reduction <add>, %270, %cst_105 [2] : vector<2x8x8xf32> to vector<2x8xf32>
    %272 = vector.shape_cast %271 : vector<2x8xf32> to vector<2x8x1xf32>
    %273 = tpu.reciprocal %272 {approx = true} : vector<2x8x1xf32> -> vector<2x8x1xf32>
    %274 = vector.broadcast %273 : vector<2x8x1xf32> to vector<2x8x8xf32>
    %275 = arith.mulf %270, %274 : vector<2x8x8xf32>
    "tpu.trace_start"() <{level = 10 : i32, message = "bqk,bkd->bqd"}> : () -> ()
    %cst_106 = arith.constant dense<0.000000e+00> : vector<2x8x8xf32>
    %276 = tpu.matmul %275, %262, %cst_106 {dimension_numbers = #tpu.dot_dimension_numbers<[2], [1], [1], [2], [0, 0, 0, 1, 1, 2], [0], [0]>} : vector<2x8x8xf32>, vector<2x8x8xf32>, vector<2x8x8xf32> -> vector<2x8x8xf32>
    "tpu.trace_stop"() : () -> ()
    %277 = tpu.concatenate %225, %242, %259, %276 in 2 : vector<2x8x8xf32>, vector<2x8x8xf32>, vector<2x8x8xf32>, vector<2x8x8xf32> -> vector<2x8x32xf32>
    %278 = vector.shape_cast %277 : vector<2x8x32xf32> to vector<16x32xf32>
    %c1_107 = arith.constant 1 : index
    %c0_108 = arith.constant 0 : index
    %c0_109 = arith.constant 0 : index
    %279 = vector.load %arg6[%c1_107, %c0_108, %c0_109] : memref<2x32x32xf32, #tpu.memory_space<vmem>>, vector<1x32x32xf32>
    %280 = vector.shape_cast %279 : vector<1x32x32xf32> to vector<32x32xf32>
    %c1_110 = arith.constant 1 : index
    %c0_111 = arith.constant 0 : index
    %c0_112 = arith.constant 0 : index
    %281 = vector.load %arg7[%c1_110, %c0_111, %c0_112] : memref<2x1x32xf32, #tpu.memory_space<vmem>>, vector<1x1x32xf32>
    %282 = vector.shape_cast %281 : vector<1x1x32xf32> to vector<1x32xf32>
    %cst_113 = arith.constant dense<0.000000e+00> : vector<16x32xf32>
    %283 = tpu.matmul %278, %280, %cst_113 {dimension_numbers = #tpu.dot_dimension_numbers<[1], [0], [0], [1], [0, 0, 1, 1], [], []>} : vector<16x32xf32>, vector<32x32xf32>, vector<16x32xf32> -> vector<16x32xf32>
    %284 = vector.broadcast %282 : vector<1x32xf32> to vector<16x32xf32>
    %285 = arith.addf %283, %284 : vector<16x32xf32>
    %286 = arith.addf %285, %195 : vector<16x32xf32>
    %c1_114 = arith.constant 1 : index
    %c0_115 = arith.constant 0 : index
    %c0_116 = arith.constant 0 : index
    %287 = vector.load %arg8[%c1_114, %c0_115, %c0_116] : memref<2x1x32xf32, #tpu.memory_space<vmem>>, vector<1x1x32xf32>
    %288 = vector.shape_cast %287 : vector<1x1x32xf32> to vector<1x32xf32>
    %c1_117 = arith.constant 1 : index
    %c0_118 = arith.constant 0 : index
    %c0_119 = arith.constant 0 : index
    %289 = vector.load %arg9[%c1_117, %c0_118, %c0_119] : memref<2x1x32xf32, #tpu.memory_space<vmem>>, vector<1x1x32xf32>
    %290 = vector.shape_cast %289 : vector<1x1x32xf32> to vector<1x32xf32>
    %cst_120 = arith.constant dense<0.000000e+00> : vector<16xf32>
    %291 = vector.multi_reduction <add>, %286, %cst_120 [1] : vector<16x32xf32> to vector<16xf32>
    %292 = vector.shape_cast %291 : vector<16xf32> to vector<16x1xf32>
    %cst_121 = arith.constant 3.200000e+01 : f32
    %293 = vector.broadcast %cst_121 : f32 to vector<16x1xf32>
    %294 = arith.divf %292, %293 : vector<16x1xf32>
    %295 = vector.broadcast %294 : vector<16x1xf32> to vector<16x32xf32>
    %296 = arith.subf %286, %295 : vector<16x32xf32>
    %297 = arith.mulf %296, %296 : vector<16x32xf32>
    %cst_122 = arith.constant dense<0.000000e+00> : vector<16xf32>
    %298 = vector.multi_reduction <add>, %297, %cst_122 [1] : vector<16x32xf32> to vector<16xf32>
    %299 = vector.shape_cast %298 : vector<16xf32> to vector<16x1xf32>
    %cst_123 = arith.constant 3.200000e+01 : f32
    %300 = vector.broadcast %cst_123 : f32 to vector<16x1xf32>
    %301 = arith.divf %299, %300 : vector<16x1xf32>
    %cst_124 = arith.constant 9.99999996E-13 : f32
    %302 = vector.broadcast %cst_124 : f32 to vector<16x1xf32>
    %303 = arith.addf %301, %302 : vector<16x1xf32>
    %304 = math.rsqrt %303 : vector<16x1xf32>
    %305 = vector.broadcast %304 : vector<16x1xf32> to vector<16x32xf32>
    %306 = arith.mulf %296, %305 : vector<16x32xf32>
    %307 = vector.broadcast %288 : vector<1x32xf32> to vector<16x32xf32>
    %308 = arith.mulf %306, %307 : vector<16x32xf32>
    %309 = vector.broadcast %290 : vector<1x32xf32> to vector<16x32xf32>
    %310 = arith.addf %308, %309 : vector<16x32xf32>
    %c1_125 = arith.constant 1 : index
    %c0_126 = arith.constant 0 : index
    %c0_127 = arith.constant 0 : index
    %311 = vector.load %arg10[%c1_125, %c0_126, %c0_127] : memref<2x32x128xf32, #tpu.memory_space<vmem>>, vector<1x32x128xf32>
    %312 = vector.shape_cast %311 : vector<1x32x128xf32> to vector<32x128xf32>
    %c1_128 = arith.constant 1 : index
    %c0_129 = arith.constant 0 : index
    %c0_130 = arith.constant 0 : index
    %313 = vector.load %arg11[%c1_128, %c0_129, %c0_130] : memref<2x1x128xf32, #tpu.memory_space<vmem>>, vector<1x1x128xf32>
    %314 = vector.shape_cast %313 : vector<1x1x128xf32> to vector<1x128xf32>
    %cst_131 = arith.constant dense<0.000000e+00> : vector<16x128xf32>
    %315 = tpu.matmul %310, %312, %cst_131 {dimension_numbers = #tpu.dot_dimension_numbers<[1], [0], [0], [1], [0, 0, 1, 1], [], []>} : vector<16x32xf32>, vector<32x128xf32>, vector<16x128xf32> -> vector<16x128xf32>
    %316 = vector.broadcast %314 : vector<1x128xf32> to vector<16x128xf32>
    %317 = arith.addf %315, %316 : vector<16x128xf32>
    %cst_132 = arith.constant 5.000000e-01 : f32
    %318 = vector.broadcast %cst_132 : f32 to vector<16x128xf32>
    %319 = arith.mulf %318, %317 : vector<16x128xf32>
    %cst_133 = arith.constant 4.471500e-02 : f32
    %320 = vector.broadcast %cst_133 : f32 to vector<16x128xf32>
    %321 = arith.mulf %320, %317 : vector<16x128xf32>
    %322 = arith.mulf %321, %317 : vector<16x128xf32>
    %323 = arith.mulf %322, %317 : vector<16x128xf32>
    %324 = arith.addf %317, %323 : vector<16x128xf32>
    %cst_134 = arith.constant 0.797884583 : f32
    %325 = vector.broadcast %cst_134 : f32 to vector<16x128xf32>
    %326 = arith.mulf %325, %324 : vector<16x128xf32>
    %327 = math.tanh %326 : vector<16x128xf32>
    %cst_135 = arith.constant 1.000000e+00 : f32
    %328 = vector.broadcast %cst_135 : f32 to vector<16x128xf32>
    %329 = arith.addf %328, %327 : vector<16x128xf32>
    %330 = arith.mulf %319, %329 : vector<16x128xf32>
    %c1_136 = arith.constant 1 : index
    %c0_137 = arith.constant 0 : index
    %c0_138 = arith.constant 0 : index
    %331 = vector.load %arg12[%c1_136, %c0_137, %c0_138] : memref<2x128x32xf32, #tpu.memory_space<vmem>>, vector<1x128x32xf32>
    %332 = vector.shape_cast %331 : vector<1x128x32xf32> to vector<128x32xf32>
    %c1_139 = arith.constant 1 : index
    %c0_140 = arith.constant 0 : index
    %c0_141 = arith.constant 0 : index
    %333 = vector.load %arg13[%c1_139, %c0_140, %c0_141] : memref<2x1x32xf32, #tpu.memory_space<vmem>>, vector<1x1x32xf32>
    %334 = vector.shape_cast %333 : vector<1x1x32xf32> to vector<1x32xf32>
    %cst_142 = arith.constant dense<0.000000e+00> : vector<16x32xf32>
    %335 = tpu.matmul %330, %332, %cst_142 {dimension_numbers = #tpu.dot_dimension_numbers<[1], [0], [0], [1], [0, 0, 1, 1], [], []>} : vector<16x128xf32>, vector<128x32xf32>, vector<16x32xf32> -> vector<16x32xf32>
    %336 = vector.broadcast %334 : vector<1x32xf32> to vector<16x32xf32>
    %337 = arith.addf %335, %336 : vector<16x32xf32>
    %338 = arith.addf %337, %310 : vector<16x32xf32>
    %c1_143 = arith.constant 1 : index
    %c0_144 = arith.constant 0 : index
    %c0_145 = arith.constant 0 : index
    %339 = vector.load %arg14[%c1_143, %c0_144, %c0_145] : memref<2x1x32xf32, #tpu.memory_space<vmem>>, vector<1x1x32xf32>
    %340 = vector.shape_cast %339 : vector<1x1x32xf32> to vector<1x32xf32>
    %c1_146 = arith.constant 1 : index
    %c0_147 = arith.constant 0 : index
    %c0_148 = arith.constant 0 : index
    %341 = vector.load %arg15[%c1_146, %c0_147, %c0_148] : memref<2x1x32xf32, #tpu.memory_space<vmem>>, vector<1x1x32xf32>
    %342 = vector.shape_cast %341 : vector<1x1x32xf32> to vector<1x32xf32>
    %cst_149 = arith.constant dense<0.000000e+00> : vector<16xf32>
    %343 = vector.multi_reduction <add>, %338, %cst_149 [1] : vector<16x32xf32> to vector<16xf32>
    %344 = vector.shape_cast %343 : vector<16xf32> to vector<16x1xf32>
    %cst_150 = arith.constant 3.200000e+01 : f32
    %345 = vector.broadcast %cst_150 : f32 to vector<16x1xf32>
    %346 = arith.divf %344, %345 : vector<16x1xf32>
    %347 = vector.broadcast %346 : vector<16x1xf32> to vector<16x32xf32>
    %348 = arith.subf %338, %347 : vector<16x32xf32>
    %349 = arith.mulf %348, %348 : vector<16x32xf32>
    %cst_151 = arith.constant dense<0.000000e+00> : vector<16xf32>
    %350 = vector.multi_reduction <add>, %349, %cst_151 [1] : vector<16x32xf32> to vector<16xf32>
    %351 = vector.shape_cast %350 : vector<16xf32> to vector<16x1xf32>
    %cst_152 = arith.constant 3.200000e+01 : f32
    %352 = vector.broadcast %cst_152 : f32 to vector<16x1xf32>
    %353 = arith.divf %351, %352 : vector<16x1xf32>
    %cst_153 = arith.constant 9.99999996E-13 : f32
    %354 = vector.broadcast %cst_153 : f32 to vector<16x1xf32>
    %355 = arith.addf %353, %354 : vector<16x1xf32>
    %356 = math.rsqrt %355 : vector<16x1xf32>
    %357 = vector.broadcast %356 : vector<16x1xf32> to vector<16x32xf32>
    %358 = arith.mulf %348, %357 : vector<16x32xf32>
    %359 = vector.broadcast %340 : vector<1x32xf32> to vector<16x32xf32>
    %360 = arith.mulf %358, %359 : vector<16x32xf32>
    %361 = vector.broadcast %342 : vector<1x32xf32> to vector<16x32xf32>
    %362 = arith.addf %360, %361 : vector<16x32xf32>
    %363 = vector.extract_strided_slice %362 {offsets = [0, 0], sizes = [1, 32], strides = [1, 1]} : vector<16x32xf32> to vector<1x32xf32>
    %364 = vector.extract_strided_slice %362 {offsets = [8, 0], sizes = [1, 32], strides = [1, 1]} : vector<16x32xf32> to vector<1x32xf32>
    %365 = tpu.concatenate %363, %364 in 0 : vector<1x32xf32>, vector<1x32xf32> -> vector<2x32xf32>
    %c0_154 = arith.constant 0 : index
    %c0_155 = arith.constant 0 : index
    %366 = vector.load %arg16[%c0_154, %c0_155] : memref<32x32xf32, #tpu.memory_space<vmem>>, vector<32x32xf32>
    %c0_156 = arith.constant 0 : index
    %c0_157 = arith.constant 0 : index
    %367 = vector.load %arg17[%c0_156, %c0_157] : memref<1x32xf32, #tpu.memory_space<vmem>>, vector<1x32xf32>
    %cst_158 = arith.constant dense<0.000000e+00> : vector<2x32xf32>
    %368 = tpu.matmul %365, %366, %cst_158 {dimension_numbers = #tpu.dot_dimension_numbers<[1], [0], [0], [1], [0, 0, 1, 1], [], []>} : vector<2x32xf32>, vector<32x32xf32>, vector<2x32xf32> -> vector<2x32xf32>
    %369 = vector.broadcast %367 : vector<1x32xf32> to vector<2x32xf32>
    %370 = arith.addf %368, %369 : vector<2x32xf32>
    %371 = math.tanh %370 : vector<2x32xf32>
    %c0_159 = arith.constant 0 : index
    %c0_160 = arith.constant 0 : index
    %372 = vector.load %arg18[%c0_159, %c0_160] : memref<32x3xf32, #tpu.memory_space<vmem>>, vector<32x3xf32>
    %c0_161 = arith.constant 0 : index
    %c0_162 = arith.constant 0 : index
    %373 = vector.load %arg19[%c0_161, %c0_162] : memref<1x3xf32, #tpu.memory_space<vmem>>, vector<1x3xf32>
    %cst_163 = arith.constant dense<0.000000e+00> : vector<2x3xf32>
    %374 = tpu.matmul %371, %372, %cst_163 {dimension_numbers = #tpu.dot_dimension_numbers<[1], [0], [0], [1], [0, 0, 1, 1], [], []>} : vector<2x32xf32>, vector<32x3xf32>, vector<2x3xf32> -> vector<2x3xf32>
    %375 = vector.broadcast %373 : vector<1x3xf32> to vector<2x3xf32>
    %376 = arith.addf %374, %375 : vector<2x3xf32>
    %c0_164 = arith.constant 0 : index
    %c0_165 = arith.constant 0 : index
    %377 = vector.load %arg20[%c0_164, %c0_165] : memref<2x3xf32, #tpu.memory_space<vmem>>, vector<2x3xf32>
    tpu.vector_store %arg20[%c0_164, %c0_165], %376 {strides = array<i32>} : memref<2x3xf32, #tpu.memory_space<vmem>>, vector<2x3xf32>,
    return
  }
}

</mosaic_0001>

<bundles_post_ra>
// kernel: bert_class_forward.1
= control target key start
LH: loop header
LB: loop body
LE: loop exit
PB: predicated region body
PF: predicated region fallthrough
CT: control target
= control target key end

     0   :  { %s5564_s0 = inlined_call_operand.vmem [shape: f32[16,32], index: 0, kind: input, shape index: {}]   ;;  %s5565_s1 = inlined_call_operand.vmem [shape: f32[2,8], index: 1, kind: input, shape index: {}]   ;;  %s5566_s2 = inlined_call_operand.vmem [shape: f32[1,32], index: 2, kind: input, shape index: {}]   ;;  %s5567_s3 = inlined_call_operand.vmem [shape: f32[1,32], index: 3, kind: input, shape index: {}]   ;;  %s5568_s4 = inlined_call_operand.vmem [shape: f32[2,32,96], index: 4, kind: input, shape index: {}]   ;;  %s5569_s5 = inlined_call_operand.vmem [shape: f32[2,1,96], index: 5, kind: input, shape index: {}]   ;;  %s5570_s6 = inlined_call_operand.vmem [shape: f32[2,32,32], index: 6, kind: input, shape index: {}]   ;;  %s5571_s7 = inlined_call_operand.vmem [shape: f32[2,1,32], index: 7, kind: input, shape index: {}]   ;;  %s5572_s8 = inlined_call_operand.vmem [shape: f32[2,1,32], index: 8, kind: input, shape index: {}]   ;;  %s5573_s9 = inlined_call_operand.vmem [shape: f32[2,1,32], index: 9, kind: input, shape index: {}]   ;;  %s5574_s10 = inlined_call_operand.vmem [shape: f32[2,32,128], index: 10, kind: input, shape index: {}]   ;;  %s5575_s11 = inlined_call_operand.vmem [shape: f32[2,1,128], index: 11, kind: input, shape index: {}]   ;;  %s5576_s12 = inlined_call_operand.vmem [shape: f32[2,128,32], index: 12, kind: input, shape index: {}]   ;;  %s5577_s13 = inlined_call_operand.vmem [shape: f32[2,1,32], index: 13, kind: input, shape index: {}]   ;;  %s5578_s14 = inlined_call_operand.vmem [shape: f32[2,1,32], index: 14, kind: input, shape index: {}]   ;;  %s5579_s15 = inlined_call_operand.vmem [shape: f32[2,1,32], index: 15, kind: input, shape index: {}]   ;;  %s5580_s16 = inlined_call_operand.vmem [shape: f32[32,32], index: 16, kind: input, shape index: {}]   ;;  %s5581_s17 = inlined_call_operand.vmem [shape: f32[1,32], index: 17, kind: input, shape index: {}]   ;;  %s5582_s18 = inlined_call_operand.vmem [shape: f32[32,3], index: 18, kind: input, shape index: {}]   ;;  %s5583_s19 = inlined_call_operand.vmem [shape: f32[1,3], index: 19, kind: input, shape index: {}]   ;;  %s5584_s20 = inlined_call_operand.hbm [shape: f32[2,3], index: 20, kind: output, shape index: {}]  }
   0x1   :  { %5603 = sst [smem:[#allocation5_spill]] %s5564_s0 }
   0x2   :  { %5604 = sst [smem:[#allocation6_spill]] %s5565_s1 }
   0x3   :  { %5605 = sst [smem:[#allocation7_spill]] %s5566_s2 }
   0x4   :  { %5606 = sst [smem:[#allocation8_spill]] %s5567_s3 }
   0x5   :  { %5607 = sst [smem:[#allocation9_spill]] %s5568_s4 }
   0x6   :  { %s5608_s23 = sld [smem:[#allocation5_spill]]  ;;  %vm70_vm0 = vcmask 261120  }
   0xc   :  { %v66_v0 = vld [vmem:[%s5608_s23] sm:$0xff]  ;;  %v67_v1 = vld [vmem:[%s5608_s23 + $0x8] sm:$0xff] }
   0xd   :  { %25 = vsyncpa [#allocation3], 0  ;;  %v71_v2 = vsel %vm70_vm0, %v66_v0, 0.0  ;;  %v74_v3 = vsel %vm70_vm0, %v67_v1, 0.0  ;;  %s5609_s26 = sld [smem:[#allocation9_spill]]  ;;  %v4743_v34 = vmov 0.0   ;;  %v121_v46 = vlaneseq }
   0xe   :  { %72 = vadd.xlane.f32.xlu0 %v71_v2  ;;  %s5610_s22 = sld [smem:[#allocation7_spill]]  ;;  %4312 = vmatprep.subr.mxu0 %v4743_v34  ;;  %vm4744_vm1 = vmmov 0   ;;  %v4029_v35 = vld [vmem:[%s5569_s5] ss:$0 sm:$0xff]  ;;  %s4745_s27 = smov 96   ;;  %vm247_vm2 = vcmask 64512  }
   0xf   :  { %s5611_s2 = sld [smem:[#allocation8_spill]]  ;;  %4314 = vmatprep.mubr.msk.f32.mxu0 %vm4744_vm1, %v4743_v34  ;;  %v4746_v44 = vmov 1966171168   ;;  %v122_v50 = vshrl.u32 %v121_v46, 7  ;;  %s4747_s30 = smov 64   ;;  %vm1594_vm3 = vcmask 195584  }
  0x10   :  { %v119_v45 = vunpack.c.l.s4 %v4746_v44  ;;  %s5612_s29 = sld [smem:[#allocation6_spill]]  ;;  %s4748_s0 = smov 88   ;;  %vm1591_vm4 = vcmask 130048   ;;  %vm3840_vm5 = vcmask 1040384   ;;  %vm4011_vm6 = vcmask 17408  }
  0x11   :  { %v236_v55 = vsub.s32 0, %v122_v50  ;;  %s4749_s21 = smov 120   ;;  %s4750_s1 = smov 56  }
  0x12   :  { %75 = vadd.xlane.f32.xlu0 %v74_v3  ;;  %v120_v49 = vunpack.c.0.s8 %v119_v45  ;;  %s5599_s23 = smov 112   ;;  %s5597_s24 = smov 48  }
  0x13   :  { %v143_v14 = vld [vmem:[%s5609_s26 + $0x18] sm:$0xff]  ;;  %v142_v15 = vld [vmem:[%s5609_s26 + $0x10] sm:$0xff]  ;;  %v141_v16 = vld [vmem:[%s5609_s26 + $0x8] sm:$0xff]  ;;  %s5593_s25 = smov 104   ;;  %s5589_s3 = smov 40  }
  0x14   :  { %4291 = vmatprep.subr.mxu1 %v143_v14  ;;  %v140_v17 = vld [vmem:[%s5609_s26] sm:$0xff]  ;;  %v123_v52 = vsub.s32 %v120_v49, %v122_v50  ;;  %s5587_s28 = smov 8   ;;  %s5591_s4 = smov 16  }
  0x15   :  { %4292 = vmatpush3.msra.mxu1 %v143_v14  ;;  %v4027_v25 = vld [vmem:[%s5610_s22] ss:$0 sm:$0xff]  ;;  %s4751_s22 = smov 80  }
  0x16   :  { %4293 = vmatprep.subr.mxu1 %v142_v15  ;;  %v4028_v27 = vld [vmem:[%s5611_s2] ss:$0 sm:$0xff]  ;;  %s5595_s2 = smov 72  }
  0x17   :  { %4294 = vmatpush3.msra.mxu1 %v142_v15  ;;  %v114_v47 = vld [vmem:[%s5612_s29] sm:$0x3] }
  0x18   :  { %4295 = vmatprep.subr.mxu1 %v141_v16  ;;  %v115_v48 = vsub.f32 1.0, %v114_v47 }
  0x19   :  { %4296 = vmatpush3.msra.mxu1 %v141_v16 }
  0x1a   :  { %4297 = vmatprep.subr.mxu1 %v140_v17  ;;  %v116_v51 = vmul.f32 -10000.0, %v115_v48 }
  0x1b   :  { %4298 = vmatpush3.msra.mxu1 %v140_v17 }
  0x1c   :  { %4302 = vmatprep.subr.mxu1 %v4743_v34  ;;  %v124_v53 = vrot.slane %v116_v51, %v123_v52 }
  0x1e   :  { %v132_v54 = vrot.slane %v124_v53, %v123_v52  ;;  %v125_v56 = vcombine.high %v124_v53, %v124_v53 }
  0x20   :  { %v4940_v57 = vrot.slane %v132_v54, %v236_v55  ;;  %v139_v58 = vrot.slane %v125_v56, %v123_v52 }
  0x22   :  { %v4943_v61 = vrot.slane %v139_v58, %v236_v55 }
  0x97   :  { %v73_v4 = vpop.xlane.xlu0 %72 }
  0x98   :  { %v78_v5 = vmul.f32 0.03125, %v73_v4 }
  0x9a   :  { %v80_v6 = vsub.f32 %v66_v0, %v78_v5 }
  0x9b   :  { %v76_v7 = vpop.xlane.xlu0 %75 }
  0x9c   :  { %v79_v8 = vmul.f32 0.03125, %v76_v7  ;;  %v82_v9 = vmul.f32 %v80_v6, %v80_v6 }
  0x9e   :  { %v81_v10 = vsub.f32 %v67_v1, %v79_v8  ;;  %v84_v11 = vsel %vm70_vm0, %v82_v9, 0.0 }
  0x9f   :  { %85 = vadd.xlane.f32.xlu1 %v84_v11 }
  0xa0   :  { %v83_v12 = vmul.f32 %v81_v10, %v81_v10 }
  0xa2   :  { %v87_v13 = vsel %vm70_vm0, %v83_v12, 0.0 }
  0xa3   :  { %88 = vadd.xlane.f32.xlu1 %v87_v13 }
 0x128   :  { %v86_v18 = vpop.xlane.xlu1 %85 }
 0x129   :  { %v90_v19 = vmul.f32 0.03125, %v86_v18 }
 0x12b   :  { %v92_v20 = vadd.f32 1e-12, %v90_v19 }
 0x12c   :  { %v89_v21 = vpop.xlane.xlu1 %88 }
 0x12d   :  { %4627 = vrsqrt.f32 %v92_v20  ;;  %v91_v22 = vmul.f32 0.03125, %v89_v21 }
 0x12f   :  { %v93_v23 = vadd.f32 1e-12, %v91_v22 }
 0x131   :  { %4629 = vrsqrt.f32 %v93_v23 }
 0x13a   :  { %v4628_v24 = vpop.eup %4627 }
 0x13b   :  { %v96_v26 = vmul.f32 %v4628_v24, %v80_v6 }
 0x13d   :  { %v104_v28 = vmul.f32 %v4027_v25, %v96_v26 }
 0x13e   :  { %v4630_v29 = vpop.eup %4629 }
 0x13f   :  { %v97_v30 = vmul.f32 %v4630_v29, %v81_v10  ;;  %v4894_v31 = vadd.f32 %v4028_v27, %v104_v28 }
 0x141   :  { %v105_v32 = vmul.f32 %v4027_v25, %v97_v30  ;;  %4299 = vmatprep.mubr.msk.f32.mxu1 %vm70_vm0, %v4894_v31 }
 0x143   :  { %v4898_v33 = vadd.f32 %v4028_v27, %v105_v32 }
 0x145   :  { %4300 = vmatmul.mubr.msk.f32.vlgmr.msra.gmra.mxu1 %vm70_vm0, %v4898_v33 }
 0x146   :  { %4304 = vmatprep.mubr.msk.f32.mxu1 %vm4744_vm1, %v4743_v34 }
 0x205   :  { %v4301_v36 = vpop.f32.mrf.mxu1 }
 0x206   :  { %v4911_v37 = vadd.f32 %v4301_v36, %v4029_v35 }
 0x207   :  { %v223_v38 = vpop.f32.mrf.mxu1 }
 0x208   :  { %v4913_v39 = vadd.f32 %v4029_v35, %v223_v38  ;;  %324 = vrot.lane.b32.xlu1 %v4911_v37, %s4745_s27  ;;  %v4930_v43 = vmul.f32 0.35355338, %v4911_v37 }
 0x20a   :  { %245 = vrot.lane.b32.xlu0 %v4913_v39, %s4745_s27  ;;  %v4921_v41 = vmul.f32 0.35355338, %v4913_v39 }
 0x27a   :  { %v325_v42 = vpop.permute.xlu1 %324 }
 0x27c   :  { %v246_v40 = vpop.permute.xlu0 %245 }
 0x27d   :  { %4303 = vmatpush3.xpose.msk.msra.mxu1 %vm247_vm2, %v246_v40 }
 0x27e   :  { %4307 = vmatprep.subr.mxu1 %v4743_v34 }
 0x280   :  { %4305 = vmatmul.mubr.msk.f32.vlgmr.msra.gmra.mxu1 %vm247_vm2, %v4921_v41 }
 0x281   :  { %4308 = vmatpush3.xpose.msk.msra.mxu1 %vm247_vm2, %v325_v42  ;;  %4309 = vmatprep.mubr.msk.f32.mxu1 %vm4744_vm1, %v4743_v34 }
 0x282   :  { %4317 = vmatprep.subr.mxu1 %v4743_v34 }
 0x284   :  { %4310 = vmatmul.mubr.msk.f32.vlgmr.msra.gmra.mxu1 %vm247_vm2, %v4930_v43 }
 0x285   :  { %4319 = vmatprep.mubr.msk.f32.mxu1 %vm4744_vm1, %v4743_v34 }
 0x340   :  { %v319_v59 = vpop.f32.mrf.mxu1 }
 0x341   :  { %v320_v60 = vadd.f32 %v319_v59, %v4940_v57 }
 0x342   :  { %v4306_v62 = vpop.f32.mrf.mxu1 }
 0x343   :  { %v401_v63 = vsel %vm247_vm2, %v320_v60, -inf }
 0x344   :  { %402 = vmax.xlane.f32.xlu1 %v401_v63  ;;  %v397_v0 = vpop.f32.mrf.mxu1 }
 0x345   :  { %v398_v1 = vadd.f32 %v397_v0, %v4943_v61 }
 0x346   :  { %v4311_v2 = vpop.f32.mrf.mxu1 }
 0x347   :  { %v404_v3 = vsel %vm247_vm2, %v398_v1, -inf }
 0x348   :  { %405 = vmax.xlane.f32.xlu0 %v404_v3 }
 0x355   :  { %499 = vrot.lane.b32.xlu1 %v4911_v37, %s4747_s30 }
 0x359   :  { %577 = vrot.lane.b32.xlu1 %v4913_v39, %s4748_s0 }
 0x35d   :  { %655 = vrot.lane.b32.xlu1 %v4911_v37, %s4748_s0 }
 0x3cd   :  { %v403_v4 = vpop.xlane.xlu1 %402 }
 0x3ce   :  { %v407_v5 = vsub.f32 %v320_v60, %v403_v4 }
 0x3d0   :  { %v409_v6 = vmul.f32 1.442695, %v407_v5 }
 0x3d1   :  { %v500_v7 = vpop.permute.xlu1 %499  ;;  %v406_v8 = vpop.xlane.xlu0 %405 }
 0x3d2   :  { %4631 = vpow2.f32 %v409_v6  ;;  %v408_v9 = vsub.f32 %v398_v1, %v406_v8  ;;  %4318 = vmatpush3.msra.mxu1 %v500_v7 }
 0x3d3   :  { %4327 = vmatprep.subr.mxu1 %v4743_v34 }
 0x3d4   :  { %v411_v10 = vmul.f32 1.442695, %v408_v9 }
 0x3d5   :  { %v578_v15 = vpop.permute.xlu1 %577 }
 0x3d6   :  { %4633 = vpow2.f32 %v411_v10 }
 0x3d9   :  { %v656_v16 = vpop.permute.xlu1 %655 }
 0x3df   :  { %v4632_v11 = vpop.eup %4631 }
 0x3e0   :  { %v413_v12 = vsel %vm247_vm2, %v4632_v11, 0.0 }
 0x3e1   :  { %414 = vadd.xlane.f32.xlu0 %v413_v12 }
 0x3e3   :  { %v4634_v13 = vpop.eup %4633 }
 0x3e4   :  { %v416_v14 = vsel %vm247_vm2, %v4634_v13, 0.0 }
 0x3e5   :  { %417 = vadd.xlane.f32.xlu1 %v416_v14 }
 0x3f6   :  { %653 = vrot.lane.b32.xlu1 %v4930_v43, %s4749_s21 }
 0x3f7   :  { %423 = vrot.lane.b32.xlu0 %v4913_v39, %s4747_s30 }
 0x3fb   :  { %575 = vrot.lane.b32.xlu0 %v4921_v41, %s4749_s21 }
 0x46a   :  { %v415_v17 = vpop.xlane.xlu0 %414 }
 0x46b   :  { %4635 = vrcp.f32 %v415_v17 }
 0x46e   :  { %v418_v18 = vpop.xlane.xlu1 %417  ;;  %v424_v19 = vpop.permute.xlu0 %423 }
 0x46f   :  { %4637 = vrcp.f32 %v418_v18  ;;  %4313 = vmatpush3.msra.mxu0 %v424_v19 }
 0x470   :  { %4322 = vmatprep.subr.mxu0 %v4743_v34 }
 0x472   :  { %v576_v24 = vpop.permute.xlu0 %575  ;;  %v654_v25 = vpop.permute.xlu1 %653 }
 0x478   :  { %v4636_v20 = vpop.eup %4635 }
 0x479   :  { %v421_v21 = vmul.f32 %v4636_v20, %v4632_v11 }
 0x47b   :  { %4315 = vmatmul.mubr.msk.f32.vlgmr.msra.gmra.mxu0 %vm247_vm2, %v421_v21 }
 0x47c   :  { %v4638_v22 = vpop.eup %4637  ;;  %4323 = vmatpush3.xpose.msk.msra.mxu0 %vm247_vm2, %v578_v15  ;;  %4324 = vmatprep.mubr.msk.f32.mxu0 %vm4744_vm1, %v4743_v34 }
 0x47d   :  { %v422_v23 = vmul.f32 %v4638_v22, %v4634_v13  ;;  %4332 = vmatprep.subr.mxu0 %v4743_v34 }
 0x47f   :  { %4320 = vmatmul.mubr.msk.f32.vlgmr.msra.gmra.mxu1 %vm247_vm2, %v422_v23  ;;  %4325 = vmatmul.mubr.msk.f32.vlgmr.msra.gmra.mxu0 %vm247_vm2, %v576_v24 }
 0x480   :  { %4328 = vmatpush3.xpose.msk.msra.mxu1 %vm247_vm2, %v656_v16  ;;  %4329 = vmatprep.mubr.msk.f32.mxu1 %vm4744_vm1, %v4743_v34 }
 0x481   :  { %4337 = vmatprep.subr.mxu1 %v4743_v34  ;;  %4334 = vmatprep.mubr.msk.f32.mxu0 %vm4744_vm1, %v4743_v34 }
 0x483   :  { %4330 = vmatmul.mubr.msk.f32.vlgmr.msra.gmra.mxu1 %vm247_vm2, %v654_v25 }
 0x484   :  { %4339 = vmatprep.mubr.msk.f32.mxu1 %vm4744_vm1, %v4743_v34 }
 0x53b   :  { %v4980_v26 = vpop.f32.mrf.mxu0 }
 0x53d   :  { %v4316_v27 = vpop.f32.mrf.mxu0 }
 0x53f   :  { %v4982_v28 = vpop.f32.mrf.mxu1  ;;  %v649_v29 = vpop.f32.mrf.mxu0 }
 0x540   :  { %v650_v30 = vadd.f32 %v649_v29, %v4940_v57 }
 0x541   :  { %v4321_v32 = vpop.f32.mrf.mxu1  ;;  %v4326_v35 = vpop.f32.mrf.mxu0 }
 0x542   :  { %v731_v36 = vsel %vm247_vm2, %v650_v30, -inf }
 0x543   :  { %732 = vmax.xlane.f32.xlu0 %v731_v36  ;;  %v727_v38 = vpop.f32.mrf.mxu1 }
 0x544   :  { %v728_v40 = vadd.f32 %v727_v38, %v4943_v61 }
 0x545   :  { %v4331_v42 = vpop.f32.mrf.mxu1 }
 0x546   :  { %v734_v44 = vsel %vm247_vm2, %v728_v40, -inf }
 0x547   :  { %735 = vmax.xlane.f32.xlu1 %v734_v44 }
 0x558   :  { %829 = vrot.lane.b32.xlu1 %v4911_v37, %s4750_s1 }
 0x559   :  { %753 = vrot.lane.b32.xlu0 %v4913_v39, %s4750_s1 }
 0x55c   :  { %907 = vrot.lane.b32.xlu1 %v4913_v39, %s4751_s22 }
 0x560   :  { %985 = vrot.lane.b32.xlu1 %v4911_v37, %s4751_s22 }
 0x564   :  { %983 = vrot.lane.b32.xlu1 %v4930_v43, %s5599_s23 }
 0x5cc   :  { %v733_v45 = vpop.xlane.xlu0 %732 }
 0x5cd   :  { %v737_v46 = vsub.f32 %v650_v30, %v733_v45 }
 0x5cf   :  { %v739_v47 = vmul.f32 1.442695, %v737_v46 }
 0x5d0   :  { %v754_v48 = vpop.permute.xlu0 %753  ;;  %v736_v49 = vpop.xlane.xlu1 %735 }
 0x5d1   :  { %4639 = vpow2.f32 %v739_v47  ;;  %v738_v50 = vsub.f32 %v728_v40, %v736_v49  ;;  %4333 = vmatpush3.msra.mxu0 %v754_v48 }
 0x5d2   :  { %4342 = vmatprep.subr.mxu0 %v4743_v34 }
 0x5d3   :  { %v741_v51 = vmul.f32 1.442695, %v738_v50 }
 0x5d4   :  { %v830_v52 = vpop.permute.xlu1 %829 }
 0x5d5   :  { %4641 = vpow2.f32 %v741_v51  ;;  %4338 = vmatpush3.msra.mxu1 %v830_v52 }
 0x5d6   :  { %4347 = vmatprep.subr.mxu1 %v4743_v34 }
 0x5d8   :  { %v908_v60 = vpop.permute.xlu1 %907 }
 0x5dc   :  { %v986_v1 = vpop.permute.xlu1 %985 }
 0x5de   :  { %v4640_v53 = vpop.eup %4639 }
 0x5df   :  { %v743_v54 = vsel %vm247_vm2, %v4640_v53, 0.0 }
 0x5e0   :  { %744 = vadd.xlane.f32.xlu0 %v743_v54  ;;  %v984_v4 = vpop.permute.xlu1 %983 }
 0x5e2   :  { %v4642_v55 = vpop.eup %4641 }
 0x5e3   :  { %v746_v56 = vsel %vm247_vm2, %v4642_v55, 0.0 }
 0x5e4   :  { %747 = vadd.xlane.f32.xlu0 %v746_v56 }
 0x5fa   :  { %905 = vrot.lane.b32.xlu0 %v4921_v41, %s5599_s23 }
 0x669   :  { %v745_v58 = vpop.xlane.xlu0 %744 }
 0x66a   :  { %4643 = vrcp.f32 %v745_v58 }
 0x66d   :  { %v748_v59 = vpop.xlane.xlu0 %747 }
 0x66e   :  { %4645 = vrcp.f32 %v748_v59 }
 0x671   :  { %v906_v3 = vpop.permute.xlu0 %905 }
 0x677   :  { %v4644_v62 = vpop.eup %4643 }
 0x678   :  { %v751_v63 = vmul.f32 %v4644_v62, %v4640_v53 }
 0x67a   :  { %4335 = vmatmul.mubr.msk.f32.vlgmr.msra.gmra.mxu0 %vm247_vm2, %v751_v63 }
 0x67b   :  { %v4646_v0 = vpop.eup %4645  ;;  %4343 = vmatpush3.xpose.msk.msra.mxu0 %vm247_vm2, %v908_v60  ;;  %4344 = vmatprep.mubr.msk.f32.mxu0 %vm4744_vm1, %v4743_v34 }
 0x67c   :  { %v752_v2 = vmul.f32 %v4646_v0, %v4642_v55  ;;  %4352 = vmatprep.subr.mxu0 %v4743_v34 }
 0x67e   :  { %4340 = vmatmul.mubr.msk.f32.vlgmr.msra.gmra.mxu1 %vm247_vm2, %v752_v2  ;;  %4345 = vmatmul.mubr.msk.f32.vlgmr.msra.gmra.mxu0 %vm247_vm2, %v906_v3 }
 0x67f   :  { %4348 = vmatpush3.xpose.msk.msra.mxu1 %vm247_vm2, %v986_v1  ;;  %4349 = vmatprep.mubr.msk.f32.mxu1 %vm4744_vm1, %v4743_v34 }
 0x680   :  { %4357 = vmatprep.subr.mxu1 %v4743_v34  ;;  %4354 = vmatprep.mubr.msk.f32.mxu0 %vm4744_vm1, %v4743_v34 }
 0x682   :  { %4350 = vmatmul.mubr.msk.f32.vlgmr.msra.gmra.mxu1 %vm247_vm2, %v984_v4 }
 0x683   :  { %4359 = vmatprep.mubr.msk.f32.mxu1 %vm4744_vm1, %v4743_v34 }
 0x73a   :  { %v5020_v5 = vpop.f32.mrf.mxu0 }
 0x73c   :  { %v4336_v6 = vpop.f32.mrf.mxu0 }
 0x73e   :  { %v5022_v7 = vpop.f32.mrf.mxu1  ;;  %v979_v8 = vpop.f32.mrf.mxu0 }
 0x73f   :  { %v980_v9 = vadd.f32 %v979_v8, %v4940_v57 }
 0x740   :  { %v4341_v10 = vpop.f32.mrf.mxu1  ;;  %v4346_v11 = vpop.f32.mrf.mxu0 }
 0x741   :  { %v1061_v12 = vsel %vm247_vm2, %v980_v9, -inf }
 0x742   :  { %1062 = vmax.xlane.f32.xlu0 %v1061_v12  ;;  %v1057_v13 = vpop.f32.mrf.mxu1 }
 0x743   :  { %v1058_v14 = vadd.f32 %v1057_v13, %v4943_v61  ;;  %v1599_v13 = vld [vmem:[%s5570_s6 + $0x10] sm:$0xff] }
 0x744   :  { %v4351_v15 = vpop.f32.mrf.mxu1 }
 0x745   :  { %v1064_v16 = vsel %vm247_vm2, %v1058_v14, -inf  ;;  %v1597_v15 = vld [vmem:[%s5570_s6] sm:$0xff] }
 0x746   :  { %1065 = vmax.xlane.f32.xlu1 %v1064_v16 }
 0x757   :  { %1159 = vrot.lane.b32.xlu1 %v4911_v37, %s5597_s24 }
 0x758   :  { %1083 = vrot.lane.b32.xlu0 %v4913_v39, %s5597_s24 }
 0x75b   :  { %1237 = vrot.lane.b32.xlu1 %v4913_v39, %s5595_s2 }
 0x75f   :  { %1315 = vrot.lane.b32.xlu1 %v4911_v37, %s5595_s2 }
 0x763   :  { %1313 = vrot.lane.b32.xlu1 %v4930_v43, %s5593_s25 }
 0x7cb   :  { %v1063_v17 = vpop.xlane.xlu0 %1062 }
 0x7cc   :  { %v1067_v18 = vsub.f32 %v980_v9, %v1063_v17 }
 0x7ce   :  { %v1069_v19 = vmul.f32 1.442695, %v1067_v18 }
 0x7cf   :  { %v1084_v20 = vpop.permute.xlu0 %1083  ;;  %v1066_v21 = vpop.xlane.xlu1 %1065 }
 0x7d0   :  { %4647 = vpow2.f32 %v1069_v19  ;;  %v1068_v22 = vsub.f32 %v1058_v14, %v1066_v21  ;;  %4353 = vmatpush3.msra.mxu0 %v1084_v20  ;;  %v1598_v14 = vld [vmem:[%s5570_s6 + $0x8] sm:$0xff] }
 0x7d1   :  { %4362 = vmatprep.subr.mxu0 %v4743_v34 }
 0x7d2   :  { %v1071_v23 = vmul.f32 1.442695, %v1068_v22 }
 0x7d3   :  { %v1160_v24 = vpop.permute.xlu1 %1159 }
 0x7d4   :  { %4649 = vpow2.f32 %v1071_v23  ;;  %4358 = vmatpush3.msra.mxu1 %v1160_v24 }
 0x7d5   :  { %4367 = vmatprep.subr.mxu1 %v4743_v34 }
 0x7d7   :  { %v1238_v35 = vpop.permute.xlu1 %1237 }
 0x7db   :  { %v1316_v42 = vpop.permute.xlu1 %1315 }
 0x7dd   :  { %v4648_v25 = vpop.eup %4647 }
 0x7de   :  { %v1073_v27 = vsel %vm247_vm2, %v4648_v25, 0.0 }
 0x7df   :  { %1074 = vadd.xlane.f32.xlu0 %v1073_v27  ;;  %v1314_v45 = vpop.permute.xlu1 %1313 }
 0x7e1   :  { %v4650_v43 = vpop.eup %4649 }
 0x7e2   :  { %v1076_v29 = vsel %vm247_vm2, %v4650_v43, 0.0 }
 0x7e3   :  { %1077 = vadd.xlane.f32.xlu0 %v1076_v29 }
 0x7f9   :  { %1235 = vrot.lane.b32.xlu0 %v4921_v41, %s5593_s25 }
 0x868   :  { %v1075_v30 = vpop.xlane.xlu0 %1074 }
 0x869   :  { %4651 = vrcp.f32 %v1075_v30 }
 0x86c   :  { %v1078_v32 = vpop.xlane.xlu0 %1077 }
 0x86d   :  { %4653 = vrcp.f32 %v1078_v32 }
 0x870   :  { %v1236_v41 = vpop.permute.xlu0 %1235 }
 0x876   :  { %v4652_v36 = vpop.eup %4651 }
 0x877   :  { %v1081_v38 = vmul.f32 %v4652_v36, %v4648_v25 }
 0x879   :  { %4355 = vmatmul.mubr.msk.f32.vlgmr.msra.gmra.mxu0 %vm247_vm2, %v1081_v38 }
 0x87a   :  { %v4654_v40 = vpop.eup %4653  ;;  %4363 = vmatpush3.xpose.msk.msra.mxu0 %vm247_vm2, %v1238_v35  ;;  %4364 = vmatprep.mubr.msk.f32.mxu0 %vm4744_vm1, %v4743_v34 }
 0x87b   :  { %v1082_v44 = vmul.f32 %v4654_v40, %v4650_v43  ;;  %4372 = vmatprep.subr.mxu0 %v4743_v34 }
 0x87d   :  { %4360 = vmatmul.mubr.msk.f32.vlgmr.msra.gmra.mxu1 %vm247_vm2, %v1082_v44  ;;  %4365 = vmatmul.mubr.msk.f32.vlgmr.msra.gmra.mxu0 %vm247_vm2, %v1236_v41 }
 0x87e   :  { %4368 = vmatpush3.xpose.msk.msra.mxu1 %vm247_vm2, %v1316_v42  ;;  %4369 = vmatprep.mubr.msk.f32.mxu1 %vm4744_vm1, %v4743_v34 }
 0x87f   :  { %4377 = vmatprep.subr.mxu1 %v4743_v34  ;;  %4374 = vmatprep.mubr.msk.f32.mxu0 %vm4744_vm1, %v4743_v34 }
 0x881   :  { %4370 = vmatmul.mubr.msk.f32.vlgmr.msra.gmra.mxu1 %vm247_vm2, %v1314_v45 }
 0x882   :  { %4379 = vmatprep.mubr.msk.f32.mxu1 %vm4744_vm1, %v4743_v34 }
 0x939   :  { %v1155_v46 = vpop.f32.mrf.mxu0 }
 0x93b   :  { %v4356_v47 = vpop.f32.mrf.mxu0 }
 0x93d   :  { %v1231_v48 = vpop.f32.mrf.mxu1  ;;  %v1309_v49 = vpop.f32.mrf.mxu0 }
 0x93e   :  { %v1310_v50 = vadd.f32 %v1309_v49, %v4940_v57 }
 0x93f   :  { %v4361_v51 = vpop.f32.mrf.mxu1  ;;  %v4366_v52 = vpop.f32.mrf.mxu0 }
 0x940   :  { %v1391_v53 = vsel %vm247_vm2, %v1310_v50, -inf }
 0x941   :  { %1392 = vmax.xlane.f32.xlu0 %v1391_v53  ;;  %v1387_v54 = vpop.f32.mrf.mxu1 }
 0x942   :  { %v1388_v55 = vadd.f32 %v1387_v54, %v4943_v61 }
 0x943   :  { %v4371_v56 = vpop.f32.mrf.mxu1 }
 0x944   :  { %v1394_v58 = vsel %vm247_vm2, %v1388_v55, -inf  ;;  %v1736_v56 = vld [vmem:[%s5574_s10 + $0x8] sm:$0xff] }
 0x945   :  { %1395 = vmax.xlane.f32.xlu1 %v1394_v58  ;;  %v1735_v58 = vld [vmem:[%s5574_s10] sm:$0xff] }
 0x956   :  { %1489 = vrot.lane.b32.xlu1 %v4911_v37, %s5589_s3 }
 0x95a   :  { %1567 = vrot.lane.b32.xlu1 %v5020_v5, %s5587_s28 }
 0x95e   :  { %1569 = vrot.lane.b32.xlu1 %v5022_v7, %s5587_s28  ;;  %s5601_s28 = smov 24  }
 0x962   :  { %1577 = vrot.lane.b32.xlu1 %v1231_v48, %s5591_s4 }
 0x9ca   :  { %v1393_v59 = vpop.xlane.xlu0 %1392 }
 0x9cb   :  { %v1397_v60 = vsub.f32 %v1310_v50, %v1393_v59 }
 0x9cd   :  { %v1399_v62 = vmul.f32 1.442695, %v1397_v60 }
 0x9ce   :  { %v1396_v63 = vpop.xlane.xlu1 %1395 }
 0x9cf   :  { %4655 = vpow2.f32 %v1399_v62  ;;  %v1398_v0 = vsub.f32 %v1388_v55, %v1396_v63  ;;  %v1737_v55 = vld [vmem:[%s5574_s10 + $0x10] sm:$0xff] }
 0x9d1   :  { %v1401_v1 = vmul.f32 1.442695, %v1398_v0 }
 0x9d2   :  { %v1490_v2 = vpop.permute.xlu1 %1489 }
 0x9d3   :  { %4657 = vpow2.f32 %v1401_v1  ;;  %4378 = vmatpush3.msra.mxu1 %v1490_v2 }
 0x9d6   :  { %v1568_v20 = vpop.permute.xlu1 %1567 }
 0x9d7   :  { %v1589_v23 = vsel %vm247_vm2, %v4980_v26, %v1568_v20  ;;  %v4056_v26 = vld [vmem:[%s5571_s7] ss:$0 sm:$0xff]  ;;  %v1850_v20 = vld [vmem:[%s5576_s12 + $0x28] sm:$0xff] }
 0x9da   :  { %v1570_v21 = vpop.permute.xlu1 %1569 }
 0x9db   :  { %v1590_v29 = vsel %vm247_vm2, %v4982_v28, %v1570_v21  ;;  %v1849_v21 = vld [vmem:[%s5576_s12 + $0x20] sm:$0xff] }
 0x9dc   :  { %v4656_v37 = vpop.eup %4655 }
 0x9dd   :  { %v1403_v3 = vsel %vm247_vm2, %v4656_v37, 0.0 }
 0x9de   :  { %1404 = vadd.xlane.f32.xlu0 %v1403_v3  ;;  %v1578_v24 = vpop.permute.xlu1 %1577 }
 0x9df   :  { %v1593_v30 = vsel %vm1591_vm4, %v1590_v29, %v1578_v24  ;;  %v1846_v24 = vld [vmem:[%s5576_s12 + $0x8] sm:$0xff] }
 0x9e0   :  { %v4658_v4 = vpop.eup %4657 }
 0x9e1   :  { %v1406_v5 = vsel %vm247_vm2, %v4658_v4, 0.0 }
 0x9e2   :  { %1407 = vadd.xlane.f32.xlu0 %v1406_v5 }
 0x9f8   :  { %1413 = vrot.lane.b32.xlu0 %v4913_v39, %s5589_s3  ;;  %v1600_v39 = vld [vmem:[%s5570_s6 + $0x18] sm:$0xff] }
 0x9fc   :  { %1575 = vrot.lane.b32.xlu0 %v1155_v46, %s5591_s4 }
 0xa67   :  { %v1405_v6 = vpop.xlane.xlu0 %1404 }
 0xa68   :  { %4659 = vrcp.f32 %v1405_v6 }
 0xa6b   :  { %v1408_v7 = vpop.xlane.xlu0 %1407 }
 0xa6c   :  { %4661 = vrcp.f32 %v1408_v7 }
 0xa6f   :  { %v1414_v8 = vpop.permute.xlu0 %1413 }
 0xa70   :  { %4373 = vmatpush3.msra.mxu0 %v1414_v8 }
 0xa71   :  { %4382 = vmatprep.subr.mxu0 %v1600_v39 }
 0xa73   :  { %v1576_v22 = vpop.permute.xlu0 %1575 }
 0xa74   :  { %v1592_v25 = vsel %vm1591_vm4, %v1589_v23, %v1576_v22  ;;  %v1848_v22 = vld [vmem:[%s5576_s12 + $0x18] sm:$0xff]  ;;  %v1847_v23 = vld [vmem:[%s5576_s12 + $0x10] sm:$0xff] }
 0xa75   :  { %v4660_v9 = vpop.eup %4659 }
 0xa76   :  { %v1411_v10 = vmul.f32 %v4660_v9, %v4656_v37  ;;  %v4059_v37 = vld [vmem:[%s5572_s8] ss:$0 sm:$0xff] }
 0xa78   :  { %4375 = vmatmul.mubr.msk.f32.vlgmr.msra.gmra.mxu0 %vm247_vm2, %v1411_v10 }
 0xa79   :  { %v4662_v11 = vpop.eup %4661  ;;  %4383 = vmatpush3.msra.mxu0 %v1600_v39  ;;  %v1858_v39 = vld [vmem:[%s5576_s12 + $0x68] sm:$0xff] }
 0xa7a   :  { %v1412_v12 = vmul.f32 %v4662_v11, %v4658_v4  ;;  %4384 = vmatprep.subr.mxu0 %v1599_v13  ;;  %v4060_v4 = vld [vmem:[%s5573_s9] ss:$0 sm:$0xff]  ;;  %v1860_v11 = vld [vmem:[%s5576_s12 + $0x78] sm:$0xff] }
 0xa7b   :  { %4385 = vmatpush3.msra.mxu0 %v1599_v13  ;;  %v1857_v13 = vld [vmem:[%s5576_s12 + $0x60] sm:$0xff] }
 0xa7c   :  { %4380 = vmatmul.mubr.msk.f32.vlgmr.msra.gmra.mxu1 %vm247_vm2, %v1412_v12  ;;  %4386 = vmatprep.subr.mxu0 %v1598_v14  ;;  %v1859_v12 = vld [vmem:[%s5576_s12 + $0x70] sm:$0xff] }
 0xa7d   :  { %4387 = vmatpush3.msra.mxu0 %v1598_v14  ;;  %v1856_v14 = vld [vmem:[%s5576_s12 + $0x58] sm:$0xff] }
 0xa7e   :  { %4388 = vmatprep.subr.mxu0 %v1597_v15 }
 0xa7f   :  { %4389 = vmatpush3.msra.mxu0 %v1597_v15  ;;  %v1855_v15 = vld [vmem:[%s5576_s12 + $0x50] sm:$0xff] }
 0xa80   :  { %4404 = vmatprep.subr.mxu0 %v1860_v11 }
 0xb38   :  { %v1485_v16 = vpop.f32.mrf.mxu0 }
 0xb39   :  { %1583 = vrot.lane.b32.xlu0 %v1485_v16, %s5601_s28  ;;  %v1854_v16 = vld [vmem:[%s5576_s12 + $0x48] sm:$0xff] }
 0xb3a   :  { %v4376_v17 = vpop.f32.mrf.mxu0 }
 0xb3b   :  { %v1853_v17 = vld [vmem:[%s5576_s12 + $0x40] sm:$0xff] }
 0xb3c   :  { %v1561_v18 = vpop.f32.mrf.mxu1 }
 0xb3d   :  { %1585 = vrot.lane.b32.xlu1 %v1561_v18, %s5601_s28  ;;  %v1852_v18 = vld [vmem:[%s5576_s12 + $0x38] sm:$0xff]  ;;  %s5620_s28 = smov 24  }
 0xb3e   :  { %v4381_v19 = vpop.f32.mrf.mxu1 }
 0xb3f   :  { %v1851_v19 = vld [vmem:[%s5576_s12 + $0x30] sm:$0xff] }
 0xbab   :  { %v1584_v27 = vpop.permute.xlu0 %1583 }
 0xbac   :  { %v1595_v43 = vsel %vm1594_vm3, %v1592_v25, %v1584_v27  ;;  %v1845_v25 = vld [vmem:[%s5576_s12] sm:$0xff] }
 0xbad   :  { %4390 = vmatprep.mubr.msk.f32.mxu0 %vm70_vm0, %v1595_v43  ;;  %v4061_v27 = vld [vmem:[%s5575_s11] ss:$0 sm:$0xff] }
 0xbaf   :  { %v1586_v32 = vpop.permute.xlu1 %1585 }
 0xbb0   :  { %v1596_v35 = vsel %vm1594_vm3, %v1593_v30, %v1586_v32 }
 0xbb1   :  { %4391 = vmatmul.mubr.msk.f32.vlgmr.msra.gmra.mxu0 %vm70_vm0, %v1596_v35 }
 0xbb2   :  { %4405 = vmatpush3.msra.mxu0 %v1860_v11  ;;  %v4067_v11 = vld [vmem:[%s5609_s26 + $0x20] sm:$0xff] }
 0xbb3   :  { %4406 = vmatprep.subr.mxu0 %v1859_v12 }
 0xbb4   :  { %4407 = vmatpush3.msra.mxu0 %v1859_v12 }
 0xbb5   :  { %4408 = vmatprep.subr.mxu0 %v1858_v39 }
 0xbb6   :  { %4409 = vmatpush3.msra.mxu0 %v1858_v39 }
 0xbb7   :  { %4410 = vmatprep.subr.mxu0 %v1857_v13 }
 0xbb8   :  { %4411 = vmatpush3.msra.mxu0 %v1857_v13 }
 0xbb9   :  { %4412 = vmatprep.subr.mxu0 %v1856_v14 }
 0xbba   :  { %4413 = vmatpush3.msra.mxu0 %v1856_v14 }
 0xbbb   :  { %4414 = vmatprep.subr.mxu0 %v1855_v15 }
 0xbbc   :  { %4415 = vmatpush3.msra.mxu0 %v1855_v15 }
 0xbbd   :  { %4416 = vmatprep.subr.mxu0 %v1854_v16 }
 0xbbe   :  { %4417 = vmatpush3.msra.mxu0 %v1854_v16 }
 0xbbf   :  { %4418 = vmatprep.subr.mxu0 %v1853_v17 }
 0xbc0   :  { %4419 = vmatpush3.msra.mxu0 %v1853_v17 }
 0xbc1   :  { %4420 = vmatprep.subr.mxu0 %v1852_v18 }
 0xbc2   :  { %4421 = vmatpush3.msra.mxu0 %v1852_v18  ;;  %v4065_v18 = vld [vmem:[%s5578_s14] ss:$0 sm:$0xff] }
 0xbc3   :  { %4422 = vmatprep.subr.mxu0 %v1851_v19 }
 0xbc4   :  { %4423 = vmatpush3.msra.mxu0 %v1851_v19 }
 0xbc5   :  { %4424 = vmatprep.subr.mxu0 %v1850_v20 }
 0xbc6   :  { %4425 = vmatpush3.msra.mxu0 %v1850_v20 }
 0xbc7   :  { %4426 = vmatprep.subr.mxu0 %v1849_v21 }
 0xbc8   :  { %4427 = vmatpush3.msra.mxu0 %v1849_v21 }
 0xbc9   :  { %4428 = vmatprep.subr.mxu0 %v1848_v22 }
 0xbca   :  { %4429 = vmatpush3.msra.mxu0 %v1848_v22 }
 0xbcb   :  { %4430 = vmatprep.subr.mxu0 %v1847_v23 }
 0xbcc   :  { %4431 = vmatpush3.msra.mxu0 %v1847_v23  ;;  %v4066_v23 = vld [vmem:[%s5579_s15] ss:$0 sm:$0xff] }
 0xbcd   :  { %4432 = vmatprep.subr.mxu0 %v1846_v24 }
 0xbce   :  { %4433 = vmatpush3.msra.mxu0 %v1846_v24 }
 0xbcf   :  { %4434 = vmatprep.subr.mxu0 %v1845_v25 }
 0xbd0   :  { %4435 = vmatpush3.msra.mxu0 %v1845_v25 }
 0xbd1   :  { %4480 = vmatprep.subr.mxu0 %v4743_v34 }
 0xc71   :  { %v4392_v36 = vpop.f32.mrf.mxu0 }
 0xc72   :  { %v1686_v38 = vadd.f32 %v4392_v36, %v4056_v26 }
 0xc73   :  { %v1680_v40 = vpop.f32.mrf.mxu0 }
 0xc74   :  { %v1681_v42 = vadd.f32 %v4056_v26, %v1680_v40  ;;  %v1690_v44 = vadd.f32 %v1686_v38, %v4898_v33 }
 0xc76   :  { %v1696_v41 = vsel %vm70_vm0, %v1690_v44, 0.0  ;;  %v1689_v28 = vadd.f32 %v1681_v42, %v4894_v31  ;;  %v1738_v31 = vld [vmem:[%s5574_s10 + $0x18] sm:$0xff] }
 0xc77   :  { %1697 = vadd.xlane.f32.xlu1 %v1696_v41  ;;  %4393 = vmatprep.subr.mxu1 %v1738_v31 }
 0xc78   :  { %v1693_v45 = vsel %vm70_vm0, %v1689_v28, 0.0  ;;  %4394 = vmatpush3.msra.mxu1 %v1738_v31 }
 0xc79   :  { %1694 = vadd.xlane.f32.xlu0 %v1693_v45  ;;  %4395 = vmatprep.subr.mxu1 %v1737_v55 }
 0xc7a   :  { %4396 = vmatpush3.msra.mxu1 %v1737_v55 }
 0xc7b   :  { %4397 = vmatprep.subr.mxu1 %v1736_v56 }
 0xc7c   :  { %4398 = vmatpush3.msra.mxu1 %v1736_v56 }
 0xc7d   :  { %4399 = vmatprep.subr.mxu1 %v1735_v58 }
 0xc7e   :  { %4400 = vmatpush3.msra.mxu1 %v1735_v58 }
 0xd00   :  { %v1698_v46 = vpop.xlane.xlu1 %1697 }
 0xd01   :  { %v1700_v47 = vmul.f32 0.03125, %v1698_v46 }
 0xd02   :  { %v1695_v48 = vpop.xlane.xlu0 %1694 }
 0xd03   :  { %v1699_v49 = vmul.f32 0.03125, %v1695_v48  ;;  %v1702_v50 = vsub.f32 %v1690_v44, %v1700_v47 }
 0xd05   :  { %v1701_v51 = vsub.f32 %v1689_v28, %v1699_v49  ;;  %v1704_v54 = vmul.f32 %v1702_v50, %v1702_v50 }
 0xd07   :  { %v1703_v52 = vmul.f32 %v1701_v51, %v1701_v51  ;;  %v1708_v33 = vsel %vm70_vm0, %v1704_v54, 0.0  ;;  %v4064_v54 = vld [vmem:[%s5577_s13] ss:$0 sm:$0xff] }
 0xd09   :  { %v1705_v53 = vsel %vm70_vm0, %v1703_v52, 0.0 }
 0xd0a   :  { %1706 = vadd.xlane.f32.xlu0 %v1705_v53 }
 0xd0e   :  { %1709 = vadd.xlane.f32.xlu0 %v1708_v33 }
 0xd93   :  { %v1707_v59 = vpop.xlane.xlu0 %1706 }
 0xd94   :  { %v1711_v60 = vmul.f32 0.03125, %v1707_v59 }
 0xd96   :  { %v1713_v62 = vadd.f32 1e-12, %v1711_v60 }
 0xd97   :  { %v1710_v63 = vpop.xlane.xlu0 %1709 }
 0xd98   :  { %4663 = vrsqrt.f32 %v1713_v62  ;;  %v1712_v0 = vmul.f32 0.03125, %v1710_v63 }
 0xd9a   :  { %v1714_v1 = vadd.f32 1e-12, %v1712_v0 }
 0xd9c   :  { %4665 = vrsqrt.f32 %v1714_v1 }
 0xda5   :  { %v4664_v2 = vpop.eup %4663 }
 0xda6   :  { %v1717_v3 = vmul.f32 %v4664_v2, %v1701_v51 }
 0xda8   :  { %v1725_v5 = vmul.f32 %v4059_v37, %v1717_v3 }
 0xda9   :  { %v4666_v6 = vpop.eup %4665 }
 0xdaa   :  { %v1718_v7 = vmul.f32 %v4666_v6, %v1702_v50  ;;  %v5129_v8 = vadd.f32 %v4060_v4, %v1725_v5 }
 0xdac   :  { %v1726_v9 = vmul.f32 %v4059_v37, %v1718_v7  ;;  %4401 = vmatprep.mubr.msk.f32.mxu1 %vm70_vm0, %v5129_v8 }
 0xdae   :  { %v5133_v10 = vadd.f32 %v4060_v4, %v1726_v9  ;;  %v4069_v9 = vld [vmem:[%s5609_s26 + $0x30] sm:$0xff] }
 0xdb0   :  { %4402 = vmatmul.mubr.msk.f32.vlgmr.msra.gmra.mxu1 %vm70_vm0, %v5133_v10 }
 0xe70   :  { %v4403_v43 = vpop.f32.mrf.mxu1 }
 0xe71   :  { %v1824_v29 = vadd.f32 %v4403_v43, %v4061_v27  ;;  %v4072_v43 = vld [vmem:[%s5569_s5 + $0x1] ss:$0 sm:$0xff]  ;;  %s5613_s5 = smov 112  }
 0xe72   :  { %v1818_v30 = vpop.f32.mrf.mxu1 }
 0xe73   :  { %v1830_v32 = vmul.f32 0.044715, %v1824_v29  ;;  %v1819_v35 = vadd.f32 %v4061_v27, %v1818_v30  ;;  %v1828_v51 = vmul.f32 0.5, %v1824_v29 }
 0xe75   :  { %v1832_v26 = vmul.f32 %v1830_v32, %v1824_v29  ;;  %v1829_v36 = vmul.f32 0.044715, %v1819_v35  ;;  %v1827_v49 = vmul.f32 0.5, %v1819_v35 }
 0xe77   :  { %v1834_v38 = vmul.f32 %v1832_v26, %v1824_v29  ;;  %v1831_v40 = vmul.f32 %v1829_v36, %v1819_v35 }
 0xe79   :  { %v1836_v42 = vadd.f32 %v1834_v38, %v1824_v29  ;;  %v1833_v44 = vmul.f32 %v1831_v40, %v1819_v35 }
 0xe7b   :  { %v1835_v41 = vadd.f32 %v1833_v44, %v1819_v35  ;;  %v1838_v28 = vmul.f32 0.7978846, %v1836_v42 }
 0xe7d   :  { %v1837_v45 = vmul.f32 0.7978846, %v1835_v41  ;;  %4667 = vtanh.f32 %v1838_v28 }
 0xe7f   :  { %4669 = vtanh.f32 %v1837_v45 }
 0xe8a   :  { %v4668_v46 = vpop.eup %4667 }
 0xe8b   :  { %v1842_v48 = vadd.f32 1.0, %v4668_v46 }
 0xe8c   :  { %v4670_v47 = vpop.eup %4669 }
 0xe8d   :  { %v1841_v50 = vadd.f32 1.0, %v4670_v47  ;;  %v1844_v53 = vmul.f32 %v1842_v48, %v1828_v51 }
 0xe8f   :  { %v1843_v52 = vmul.f32 %v1841_v50, %v1827_v49 }
 0xe91   :  { %4436 = vmatprep.mubr.f32.mxu0 %v1843_v52 }
 0xe92   :  { %4437 = vmatmul.mubr.f32.vlgmr.msra.gmra.mxu0 %v1844_v53 }
 0xe93   :  { %4482 = vmatprep.mubr.msk.f32.mxu0 %vm4744_vm1, %v4743_v34 }
 0xf52   :  { %v4438_v33 = vpop.f32.mrf.mxu0 }
 0xf53   :  { %v1940_v31 = vadd.f32 %v4438_v33, %v4064_v54 }
 0xf54   :  { %v1934_v55 = vpop.f32.mrf.mxu0 }
 0xf55   :  { %v1935_v56 = vadd.f32 %v4064_v54, %v1934_v55  ;;  %v1944_v58 = vadd.f32 %v1940_v31, %v5133_v10  ;;  %v4068_v10 = vld [vmem:[%s5609_s26 + $0x28] sm:$0xff] }
 0xf57   :  { %v1950_v59 = vsel %vm70_vm0, %v1944_v58, 0.0  ;;  %v1943_v60 = vadd.f32 %v1935_v56, %v5129_v8  ;;  %v4070_v8 = vld [vmem:[%s5609_s26 + $0x38] sm:$0xff] }
 0xf58   :  { %1951 = vadd.xlane.f32.xlu1 %v1950_v59  ;;  %4439 = vmatprep.subr.mxu1 %v4070_v8 }
 0xf59   :  { %v1947_v62 = vsel %vm70_vm0, %v1943_v60, 0.0  ;;  %4440 = vmatpush3.msra.mxu1 %v4070_v8 }
 0xf5a   :  { %1948 = vadd.xlane.f32.xlu0 %v1947_v62  ;;  %4441 = vmatprep.subr.mxu1 %v4069_v9 }
 0xf5b   :  { %4442 = vmatpush3.msra.mxu1 %v4069_v9 }
 0xf5c   :  { %4443 = vmatprep.subr.mxu1 %v4068_v10 }
 0xf5d   :  { %4444 = vmatpush3.msra.mxu1 %v4068_v10 }
 0xf5e   :  { %4445 = vmatprep.subr.mxu1 %v4067_v11 }
 0xf5f   :  { %4446 = vmatpush3.msra.mxu1 %v4067_v11 }
 0xf60   :  { %4450 = vmatprep.subr.mxu1 %v4743_v34 }
 0xfe1   :  { %v1952_v63 = vpop.xlane.xlu1 %1951 }
 0xfe2   :  { %v1954_v0 = vmul.f32 0.03125, %v1952_v63 }
 0xfe3   :  { %v1949_v1 = vpop.xlane.xlu0 %1948 }
 0xfe4   :  { %v1956_v2 = vsub.f32 %v1944_v58, %v1954_v0  ;;  %v1953_v37 = vmul.f32 0.03125, %v1949_v1 }
 0xfe6   :  { %v1955_v3 = vsub.f32 %v1943_v60, %v1953_v37  ;;  %v1958_v4 = vmul.f32 %v1956_v2, %v1956_v2 }
 0xfe8   :  { %v1962_v5 = vsel %vm70_vm0, %v1958_v4, 0.0  ;;  %v1957_v6 = vmul.f32 %v1955_v3, %v1955_v3 }
 0xfe9   :  { %1963 = vadd.xlane.f32.xlu1 %v1962_v5 }
 0xfea   :  { %v1959_v7 = vsel %vm70_vm0, %v1957_v6, 0.0 }
 0xfeb   :  { %1960 = vadd.xlane.f32.xlu0 %v1959_v7 }
0x1072   :  { %v1964_v12 = vpop.xlane.xlu1 %1963 }
0x1073   :  { %v1966_v39 = vmul.f32 0.03125, %v1964_v12 }
0x1074   :  { %v1961_v13 = vpop.xlane.xlu0 %1960 }
0x1075   :  { %v1968_v14 = vadd.f32 1e-12, %v1966_v39  ;;  %v1965_v15 = vmul.f32 0.03125, %v1961_v13 }
0x1077   :  { %4671 = vrsqrt.f32 %v1968_v14  ;;  %v1967_v16 = vadd.f32 1e-12, %v1965_v15 }
0x1079   :  { %4673 = vrsqrt.f32 %v1967_v16 }
0x1084   :  { %v4672_v17 = vpop.eup %4671 }
0x1085   :  { %v1972_v19 = vmul.f32 %v4672_v17, %v1956_v2 }
0x1086   :  { %v4674_v20 = vpop.eup %4673 }
0x1087   :  { %v1971_v21 = vmul.f32 %v4674_v20, %v1955_v3  ;;  %v1980_v22 = vmul.f32 %v4065_v18, %v1972_v19 }
0x1089   :  { %v1979_v24 = vmul.f32 %v4065_v18, %v1971_v21  ;;  %v5221_v27 = vadd.f32 %v4066_v23, %v1980_v22 }
0x108b   :  { %v5219_v25 = vadd.f32 %v4066_v23, %v1979_v24 }
0x108d   :  { %4447 = vmatprep.mubr.msk.f32.mxu1 %vm70_vm0, %v5219_v25 }
0x108e   :  { %4448 = vmatmul.mubr.msk.f32.vlgmr.msra.gmra.mxu1 %vm70_vm0, %v5221_v27 }
0x108f   :  { %4452 = vmatprep.mubr.msk.f32.mxu1 %vm4744_vm1, %v4743_v34 }
0x114e   :  { %v4449_v29 = vpop.f32.mrf.mxu1 }
0x114f   :  { %v5232_v30 = vadd.f32 %v4449_v29, %v4072_v43 }
0x1150   :  { %v2074_v32 = vpop.f32.mrf.mxu1 }
0x1151   :  { %v5234_v35 = vadd.f32 %v4072_v43, %v2074_v32  ;;  %2164 = vrot.lane.b32.xlu1 %v5232_v30, %s4745_s27  ;;  %v5251_v40 = vmul.f32 0.35355338, %v5232_v30 }
0x1153   :  { %2086 = vrot.lane.b32.xlu0 %v5234_v35, %s4745_s27  ;;  %v5242_v36 = vmul.f32 0.35355338, %v5234_v35  ;;  %s5614_s27 = smov 48  }
0x11c3   :  { %v2165_v38 = vpop.permute.xlu1 %2164 }
0x11c5   :  { %v2087_v26 = vpop.permute.xlu0 %2086 }
0x11c6   :  { %4451 = vmatpush3.xpose.msk.msra.mxu1 %vm247_vm2, %v2087_v26 }
0x11c7   :  { %4455 = vmatprep.subr.mxu1 %v4743_v34 }
0x11c9   :  { %4453 = vmatmul.mubr.msk.f32.vlgmr.msra.gmra.mxu1 %vm247_vm2, %v5242_v36 }
0x11ca   :  { %4456 = vmatpush3.xpose.msk.msra.mxu1 %vm247_vm2, %v2165_v38  ;;  %4457 = vmatprep.mubr.msk.f32.mxu1 %vm4744_vm1, %v4743_v34 }
0x11cb   :  { %4460 = vmatprep.subr.mxu1 %v4743_v34 }
0x11cd   :  { %4458 = vmatmul.mubr.msk.f32.vlgmr.msra.gmra.mxu1 %vm247_vm2, %v5251_v40 }
0x11ce   :  { %4462 = vmatprep.mubr.msk.f32.mxu1 %vm4744_vm1, %v4743_v34 }
0x1289   :  { %v2159_v42 = vpop.f32.mrf.mxu1 }
0x128a   :  { %v2160_v44 = vadd.f32 %v2159_v42, %v4940_v57 }
0x128b   :  { %v4454_v41 = vpop.f32.mrf.mxu1 }
0x128c   :  { %v2241_v28 = vsel %vm247_vm2, %v2160_v44, -inf }
0x128d   :  { %2242 = vmax.xlane.f32.xlu1 %v2241_v28  ;;  %v2237_v45 = vpop.f32.mrf.mxu1 }
0x128e   :  { %v2238_v46 = vadd.f32 %v2237_v45, %v4943_v61 }
0x128f   :  { %v4459_v47 = vpop.f32.mrf.mxu1 }
0x1290   :  { %v2244_v48 = vsel %vm247_vm2, %v2238_v46, -inf }
0x1291   :  { %2245 = vmax.xlane.f32.xlu0 %v2244_v48 }
0x129e   :  { %2339 = vrot.lane.b32.xlu1 %v5232_v30, %s4747_s30 }
0x12a2   :  { %2417 = vrot.lane.b32.xlu1 %v5234_v35, %s4748_s0 }
0x12a6   :  { %2415 = vrot.lane.b32.xlu1 %v5242_v36, %s4749_s21 }
0x1316   :  { %v2243_v49 = vpop.xlane.xlu1 %2242 }
0x1317   :  { %v2247_v50 = vsub.f32 %v2160_v44, %v2243_v49 }
0x1319   :  { %v2249_v51 = vmul.f32 1.442695, %v2247_v50 }
0x131a   :  { %v2246_v52 = vpop.xlane.xlu0 %2245  ;;  %v2340_v58 = vpop.permute.xlu1 %2339 }
0x131b   :  { %4675 = vpow2.f32 %v2249_v51  ;;  %v2248_v53 = vsub.f32 %v2238_v46, %v2246_v52 }
0x131d   :  { %v2251_v54 = vmul.f32 1.442695, %v2248_v53 }
0x131e   :  { %v2418_v59 = vpop.permute.xlu1 %2417 }
0x131f   :  { %4677 = vpow2.f32 %v2251_v54 }
0x1322   :  { %v2416_v60 = vpop.permute.xlu1 %2415 }
0x1328   :  { %v4676_v33 = vpop.eup %4675 }
0x1329   :  { %v2253_v31 = vsel %vm247_vm2, %v4676_v33, 0.0 }
0x132a   :  { %2254 = vadd.xlane.f32.xlu0 %v2253_v31 }
0x132c   :  { %v4678_v55 = vpop.eup %4677 }
0x132d   :  { %v2256_v56 = vsel %vm247_vm2, %v4678_v55, 0.0 }
0x132e   :  { %2257 = vadd.xlane.f32.xlu1 %v2256_v56 }
0x133f   :  { %2493 = vrot.lane.b32.xlu1 %v5251_v40, %s4749_s21  ;;  %s5617_s21 = smov 40  }
0x1340   :  { %2263 = vrot.lane.b32.xlu0 %v5234_v35, %s4747_s30  ;;  %s5615_s30 = smov 72  }
0x1344   :  { %2495 = vrot.lane.b32.xlu0 %v5232_v30, %s4748_s0  ;;  %s5616_s0 = smov 104  }
0x13b3   :  { %v2255_v62 = vpop.xlane.xlu0 %2254 }
0x13b4   :  { %4679 = vrcp.f32 %v2255_v62 }
0x13b7   :  { %v2258_v63 = vpop.xlane.xlu1 %2257  ;;  %v2264_v0 = vpop.permute.xlu0 %2263 }
0x13b8   :  { %4681 = vrcp.f32 %v2258_v63  ;;  %4461 = vmatpush3.msra.mxu1 %v2264_v0 }
0x13b9   :  { %4465 = vmatprep.subr.mxu1 %v4743_v34 }
0x13bb   :  { %v2496_v4 = vpop.permute.xlu0 %2495  ;;  %v2494_v5 = vpop.permute.xlu1 %2493 }
0x13c1   :  { %v4680_v1 = vpop.eup %4679 }
0x13c2   :  { %v2261_v2 = vmul.f32 %v4680_v1, %v4676_v33 }
0x13c4   :  { %4463 = vmatmul.mubr.msk.f32.vlgmr.msra.gmra.mxu1 %vm247_vm2, %v2261_v2 }
0x13c5   :  { %v4682_v37 = vpop.eup %4681  ;;  %4466 = vmatpush3.msra.mxu1 %v2340_v58  ;;  %4467 = vmatprep.mubr.msk.f32.mxu1 %vm4744_vm1, %v4743_v34 }
0x13c6   :  { %4470 = vmatprep.subr.mxu1 %v4743_v34  ;;  %v2262_v3 = vmul.f32 %v4682_v37, %v4678_v55 }
0x13c8   :  { %4468 = vmatmul.mubr.msk.f32.vlgmr.msra.gmra.mxu1 %vm247_vm2, %v2262_v3 }
0x13c9   :  { %4471 = vmatpush3.xpose.msk.msra.mxu1 %vm247_vm2, %v2418_v59  ;;  %4472 = vmatprep.mubr.msk.f32.mxu1 %vm4744_vm1, %v4743_v34 }
0x13ca   :  { %4475 = vmatprep.subr.mxu1 %v4743_v34 }
0x13cc   :  { %4473 = vmatmul.mubr.msk.f32.vlgmr.msra.gmra.mxu1 %vm247_vm2, %v2416_v60 }
0x13cd   :  { %4476 = vmatpush3.xpose.msk.msra.mxu1 %vm247_vm2, %v2496_v4  ;;  %4477 = vmatprep.mubr.msk.f32.mxu1 %vm4744_vm1, %v4743_v34 }
0x13ce   :  { %4485 = vmatprep.subr.mxu1 %v4743_v34 }
0x13d0   :  { %4478 = vmatmul.mubr.msk.f32.vlgmr.msra.gmra.mxu1 %vm247_vm2, %v2494_v5 }
0x13d1   :  { %4487 = vmatprep.mubr.msk.f32.mxu1 %vm4744_vm1, %v4743_v34 }
0x1484   :  { %v5294_v6 = vpop.f32.mrf.mxu1 }
0x1486   :  { %v4464_v7 = vpop.f32.mrf.mxu1 }
0x1488   :  { %v5296_v8 = vpop.f32.mrf.mxu1 }
0x148a   :  { %v4469_v9 = vpop.f32.mrf.mxu1 }
0x148c   :  { %v2489_v10 = vpop.f32.mrf.mxu1 }
0x148d   :  { %v2490_v11 = vadd.f32 %v2489_v10, %v4940_v57 }
0x148e   :  { %v4474_v12 = vpop.f32.mrf.mxu1 }
0x148f   :  { %v2571_v39 = vsel %vm247_vm2, %v2490_v11, -inf }
0x1490   :  { %2572 = vmax.xlane.f32.xlu0 %v2571_v39  ;;  %v2567_v13 = vpop.f32.mrf.mxu1 }
0x1491   :  { %v2568_v14 = vadd.f32 %v2567_v13, %v4943_v61 }
0x1492   :  { %v4479_v15 = vpop.f32.mrf.mxu1 }
0x1493   :  { %v2574_v16 = vsel %vm247_vm2, %v2568_v14, -inf }
0x1494   :  { %2575 = vmax.xlane.f32.xlu1 %v2574_v16 }
0x14a5   :  { %2669 = vrot.lane.b32.xlu1 %v5232_v30, %s4750_s1 }
0x14a6   :  { %2593 = vrot.lane.b32.xlu0 %v5234_v35, %s4750_s1  ;;  %s5618_s1 = smov 8  }
0x14a9   :  { %2747 = vrot.lane.b32.xlu1 %v5234_v35, %s4751_s22 }
0x14ad   :  { %2825 = vrot.lane.b32.xlu1 %v5232_v30, %s4751_s22  ;;  %s5619_s22 = smov 16  }
0x14b1   :  { %2823 = vrot.lane.b32.xlu1 %v5251_v40, %s5613_s5 }
0x1519   :  { %v2573_v17 = vpop.xlane.xlu0 %2572 }
0x151a   :  { %v2577_v18 = vsub.f32 %v2490_v11, %v2573_v17 }
0x151c   :  { %v2579_v19 = vmul.f32 1.442695, %v2577_v18 }
0x151d   :  { %v2594_v20 = vpop.permute.xlu0 %2593  ;;  %v2576_v21 = vpop.xlane.xlu1 %2575 }
0x151e   :  { %4683 = vpow2.f32 %v2579_v19  ;;  %v2578_v22 = vsub.f32 %v2568_v14, %v2576_v21  ;;  %4481 = vmatpush3.msra.mxu0 %v2594_v20 }
0x151f   :  { %4490 = vmatprep.subr.mxu0 %v4743_v34 }
0x1520   :  { %v2581_v23 = vmul.f32 1.442695, %v2578_v22 }
0x1521   :  { %v2670_v24 = vpop.permute.xlu1 %2669 }
0x1522   :  { %4685 = vpow2.f32 %v2581_v23  ;;  %4486 = vmatpush3.msra.mxu1 %v2670_v24 }
0x1523   :  { %4495 = vmatprep.subr.mxu1 %v4743_v34 }
0x1525   :  { %v2748_v44 = vpop.permute.xlu1 %2747 }
0x1529   :  { %v2826_v46 = vpop.permute.xlu1 %2825 }
0x152b   :  { %v4684_v43 = vpop.eup %4683 }
0x152c   :  { %v2583_v29 = vsel %vm247_vm2, %v4684_v43, 0.0 }
0x152d   :  { %2584 = vadd.xlane.f32.xlu0 %v2583_v29  ;;  %v2824_v49 = vpop.permute.xlu1 %2823 }
0x152f   :  { %v4686_v32 = vpop.eup %4685 }
0x1530   :  { %v2586_v26 = vsel %vm247_vm2, %v4686_v32, 0.0 }
0x1531   :  { %2587 = vadd.xlane.f32.xlu0 %v2586_v26 }
0x1547   :  { %2745 = vrot.lane.b32.xlu0 %v5242_v36, %s5613_s5 }
0x15b6   :  { %v2585_v38 = vpop.xlane.xlu0 %2584 }
0x15b7   :  { %4687 = vrcp.f32 %v2585_v38 }
0x15ba   :  { %v2588_v42 = vpop.xlane.xlu0 %2587 }
0x15bb   :  { %4689 = vrcp.f32 %v2588_v42 }
0x15be   :  { %v2746_v48 = vpop.permute.xlu0 %2745 }
0x15c4   :  { %v4688_v41 = vpop.eup %4687 }
0x15c5   :  { %v2591_v28 = vmul.f32 %v4688_v41, %v4684_v43 }
0x15c7   :  { %4483 = vmatmul.mubr.msk.f32.vlgmr.msra.gmra.mxu0 %vm247_vm2, %v2591_v28 }
0x15c8   :  { %v4690_v45 = vpop.eup %4689  ;;  %4491 = vmatpush3.xpose.msk.msra.mxu0 %vm247_vm2, %v2748_v44  ;;  %4492 = vmatprep.mubr.msk.f32.mxu0 %vm4744_vm1, %v4743_v34 }
0x15c9   :  { %v2592_v47 = vmul.f32 %v4690_v45, %v4686_v32  ;;  %4500 = vmatprep.subr.mxu0 %v4743_v34 }
0x15cb   :  { %4488 = vmatmul.mubr.msk.f32.vlgmr.msra.gmra.mxu1 %vm247_vm2, %v2592_v47  ;;  %4493 = vmatmul.mubr.msk.f32.vlgmr.msra.gmra.mxu0 %vm247_vm2, %v2746_v48 }
0x15cc   :  { %4496 = vmatpush3.xpose.msk.msra.mxu1 %vm247_vm2, %v2826_v46  ;;  %4497 = vmatprep.mubr.msk.f32.mxu1 %vm4744_vm1, %v4743_v34 }
0x15cd   :  { %4505 = vmatprep.subr.mxu1 %v4743_v34  ;;  %4502 = vmatprep.mubr.msk.f32.mxu0 %vm4744_vm1, %v4743_v34 }
0x15cf   :  { %4498 = vmatmul.mubr.msk.f32.vlgmr.msra.gmra.mxu1 %vm247_vm2, %v2824_v49 }
0x15d0   :  { %4507 = vmatprep.mubr.msk.f32.mxu1 %vm4744_vm1, %v4743_v34 }
0x1687   :  { %v5334_v50 = vpop.f32.mrf.mxu0 }
0x1689   :  { %v4484_v51 = vpop.f32.mrf.mxu0 }
0x168b   :  { %v5336_v52 = vpop.f32.mrf.mxu1  ;;  %v2819_v53 = vpop.f32.mrf.mxu0 }
0x168c   :  { %v2820_v54 = vadd.f32 %v2819_v53, %v4940_v57 }
0x168d   :  { %v4489_v33 = vpop.f32.mrf.mxu1  ;;  %v4494_v31 = vpop.f32.mrf.mxu0 }
0x168e   :  { %v2901_v55 = vsel %vm247_vm2, %v2820_v54, -inf  ;;  %v4101_v31 = vld [vmem:[%s5570_s6 + $0x30] sm:$0xff] }
0x168f   :  { %2902 = vmax.xlane.f32.xlu0 %v2901_v55  ;;  %v2897_v56 = vpop.f32.mrf.mxu1  ;;  %v4100_v55 = vld [vmem:[%s5570_s6 + $0x28] sm:$0xff] }
0x1690   :  { %v2898_v58 = vadd.f32 %v2897_v56, %v4943_v61  ;;  %v4099_v56 = vld [vmem:[%s5570_s6 + $0x20] sm:$0xff] }
0x1691   :  { %v4499_v59 = vpop.f32.mrf.mxu1 }
0x1692   :  { %v2904_v60 = vsel %vm247_vm2, %v2898_v58, -inf }
0x1693   :  { %2905 = vmax.xlane.f32.xlu1 %v2904_v60 }
0x16a4   :  { %2999 = vrot.lane.b32.xlu1 %v5232_v30, %s5614_s27 }
0x16a5   :  { %2923 = vrot.lane.b32.xlu0 %v5234_v35, %s5614_s27 }
0x16a8   :  { %3077 = vrot.lane.b32.xlu1 %v5234_v35, %s5615_s30 }
0x16ac   :  { %3155 = vrot.lane.b32.xlu1 %v5232_v30, %s5615_s30 }
0x16b0   :  { %3153 = vrot.lane.b32.xlu1 %v5251_v40, %s5616_s0 }
0x1718   :  { %v2903_v62 = vpop.xlane.xlu0 %2902 }
0x1719   :  { %v2907_v63 = vsub.f32 %v2820_v54, %v2903_v62 }
0x171b   :  { %v2909_v0 = vmul.f32 1.442695, %v2907_v63 }
0x171c   :  { %v2924_v1 = vpop.permute.xlu0 %2923  ;;  %v2906_v2 = vpop.xlane.xlu1 %2905 }
0x171d   :  { %4691 = vpow2.f32 %v2909_v0  ;;  %v2908_v37 = vsub.f32 %v2898_v58, %v2906_v2  ;;  %4501 = vmatpush3.msra.mxu0 %v2924_v1 }
0x171e   :  { %4510 = vmatprep.subr.mxu0 %v4743_v34 }
0x171f   :  { %v2911_v3 = vmul.f32 1.442695, %v2908_v37 }
0x1720   :  { %v3000_v4 = vpop.permute.xlu1 %2999 }
0x1721   :  { %4693 = vpow2.f32 %v2911_v3  ;;  %4506 = vmatpush3.msra.mxu1 %v3000_v4 }
0x1722   :  { %4515 = vmatprep.subr.mxu1 %v4743_v34 }
0x1724   :  { %v3078_v12 = vpop.permute.xlu1 %3077 }
0x1728   :  { %v3156_v15 = vpop.permute.xlu1 %3155 }
0x172a   :  { %v4692_v5 = vpop.eup %4691 }
0x172b   :  { %v2913_v7 = vsel %vm247_vm2, %v4692_v5, 0.0 }
0x172c   :  { %2914 = vadd.xlane.f32.xlu0 %v2913_v7  ;;  %v3154_v17 = vpop.permute.xlu1 %3153 }
0x172e   :  { %v4694_v40 = vpop.eup %4693 }
0x172f   :  { %v2916_v9 = vsel %vm247_vm2, %v4694_v40, 0.0 }
0x1730   :  { %2917 = vadd.xlane.f32.xlu0 %v2916_v9 }
0x1746   :  { %3075 = vrot.lane.b32.xlu0 %v5242_v36, %s5616_s0 }
0x17b5   :  { %v2915_v10 = vpop.xlane.xlu0 %2914 }
0x17b6   :  { %4695 = vrcp.f32 %v2915_v10 }
0x17b9   :  { %v2918_v11 = vpop.xlane.xlu0 %2917 }
0x17ba   :  { %4697 = vrcp.f32 %v2918_v11 }
0x17bd   :  { %v3076_v36 = vpop.permute.xlu0 %3075 }
0x17c3   :  { %v4696_v39 = vpop.eup %4695 }
0x17c4   :  { %v2921_v13 = vmul.f32 %v4696_v39, %v4692_v5 }
0x17c6   :  { %4503 = vmatmul.mubr.msk.f32.vlgmr.msra.gmra.mxu0 %vm247_vm2, %v2921_v13 }
0x17c7   :  { %v4698_v14 = vpop.eup %4697  ;;  %4511 = vmatpush3.xpose.msk.msra.mxu0 %vm247_vm2, %v3078_v12  ;;  %4512 = vmatprep.mubr.msk.f32.mxu0 %vm4744_vm1, %v4743_v34 }
0x17c8   :  { %v2922_v16 = vmul.f32 %v4698_v14, %v4694_v40  ;;  %4520 = vmatprep.subr.mxu0 %v4743_v34 }
0x17ca   :  { %4508 = vmatmul.mubr.msk.f32.vlgmr.msra.gmra.mxu1 %vm247_vm2, %v2922_v16  ;;  %4513 = vmatmul.mubr.msk.f32.vlgmr.msra.gmra.mxu0 %vm247_vm2, %v3076_v36 }
0x17cb   :  { %4516 = vmatpush3.xpose.msk.msra.mxu1 %vm247_vm2, %v3156_v15  ;;  %4517 = vmatprep.mubr.msk.f32.mxu1 %vm4744_vm1, %v4743_v34 }
0x17cc   :  { %4525 = vmatprep.subr.mxu1 %v4743_v34  ;;  %4522 = vmatprep.mubr.msk.f32.mxu0 %vm4744_vm1, %v4743_v34 }
0x17ce   :  { %4518 = vmatmul.mubr.msk.f32.vlgmr.msra.gmra.mxu1 %vm247_vm2, %v3154_v17 }
0x17cf   :  { %4527 = vmatprep.mubr.msk.f32.mxu1 %vm4744_vm1, %v4743_v34 }
0x1886   :  { %v2995_v18 = vpop.f32.mrf.mxu0 }
0x1888   :  { %v4504_v19 = vpop.f32.mrf.mxu0 }
0x188a   :  { %v3071_v20 = vpop.f32.mrf.mxu1  ;;  %v3149_v21 = vpop.f32.mrf.mxu0 }
0x188b   :  { %v3150_v22 = vadd.f32 %v3149_v21, %v4940_v57 }
0x188c   :  { %v4509_v23 = vpop.f32.mrf.mxu1  ;;  %v4514_v24 = vpop.f32.mrf.mxu0 }
0x188d   :  { %v3231_v43 = vsel %vm247_vm2, %v3150_v22, -inf }
0x188e   :  { %3232 = vmax.xlane.f32.xlu0 %v3231_v43  ;;  %v3227_v29 = vpop.f32.mrf.mxu1  ;;  %v4113_v43 = vld [vmem:[%s5574_s10 + $0x30] sm:$0xff] }
0x188f   :  { %v3228_v32 = vadd.f32 %v3227_v29, %v4943_v61  ;;  %v4112_v29 = vld [vmem:[%s5574_s10 + $0x28] sm:$0xff] }
0x1890   :  { %v4519_v26 = vpop.f32.mrf.mxu1 }
0x1891   :  { %v3234_v38 = vsel %vm247_vm2, %v3228_v32, -inf }
0x1892   :  { %3235 = vmax.xlane.f32.xlu1 %v3234_v38 }
0x18a3   :  { %3329 = vrot.lane.b32.xlu1 %v5232_v30, %s5617_s21 }
0x18a7   :  { %3407 = vrot.lane.b32.xlu1 %v5334_v50, %s5618_s1 }
0x18ab   :  { %3409 = vrot.lane.b32.xlu1 %v5336_v52, %s5618_s1 }
0x18af   :  { %3417 = vrot.lane.b32.xlu1 %v3071_v20, %s5619_s22 }
0x1917   :  { %v3233_v57 = vpop.xlane.xlu0 %3232 }
0x1918   :  { %v3237_v42 = vsub.f32 %v3150_v22, %v3233_v57 }
0x191a   :  { %v3239_v44 = vmul.f32 1.442695, %v3237_v42 }
0x191b   :  { %v3236_v41 = vpop.xlane.xlu1 %3235 }
0x191c   :  { %4699 = vpow2.f32 %v3239_v44  ;;  %v3238_v61 = vsub.f32 %v3228_v32, %v3236_v41  ;;  %v4111_v32 = vld [vmem:[%s5574_s10 + $0x20] sm:$0xff] }
0x191e   :  { %v3241_v28 = vmul.f32 1.442695, %v3238_v61 }
0x191f   :  { %v3330_v45 = vpop.permute.xlu1 %3329 }
0x1920   :  { %4701 = vpow2.f32 %v3241_v28  ;;  %4526 = vmatpush3.msra.mxu1 %v3330_v45  ;;  %v4109_v28 = vld [vmem:[%s5572_s8 + $0x1] ss:$0 sm:$0xff] }
0x1923   :  { %v3408_v63 = vpop.permute.xlu1 %3407 }
0x1924   :  { %v3429_v2 = vsel %vm247_vm2, %v5294_v6, %v3408_v63  ;;  %v4104_v6 = vld [vmem:[%s5571_s7 + $0x1] ss:$0 sm:$0xff]  ;;  %v4122_v63 = vld [vmem:[%s5576_s12 + $0x98] sm:$0xff] }
0x1927   :  { %v3410_v0 = vpop.permute.xlu1 %3409 }
0x1928   :  { %v3430_v7 = vsel %vm247_vm2, %v5296_v8, %v3410_v0  ;;  %v4121_v0 = vld [vmem:[%s5576_s12 + $0x90] sm:$0xff] }
0x1929   :  { %v4700_v46 = vpop.eup %4699 }
0x192a   :  { %v3243_v30 = vsel %vm247_vm2, %v4700_v46, 0.0 }
0x192b   :  { %3244 = vadd.xlane.f32.xlu0 %v3243_v30  ;;  %v3418_v37 = vpop.permute.xlu1 %3417 }
0x192c   :  { %v3432_v40 = vsel %vm1591_vm4, %v3430_v7, %v3418_v37  ;;  %v4116_v37 = vld [vmem:[%s5575_s11 + $0x1] ss:$0 sm:$0xff] }
0x192d   :  { %v4702_v47 = vpop.eup %4701 }
0x192e   :  { %v3246_v48 = vsel %vm247_vm2, %v4702_v47, 0.0 }
0x192f   :  { %3247 = vadd.xlane.f32.xlu0 %v3246_v48 }
0x1945   :  { %3253 = vrot.lane.b32.xlu0 %v5234_v35, %s5617_s21  ;;  %v4102_v35 = vld [vmem:[%s5570_s6 + $0x38] sm:$0xff] }
0x1949   :  { %3415 = vrot.lane.b32.xlu0 %v2995_v18, %s5619_s22 }
0x19b4   :  { %v3245_v49 = vpop.xlane.xlu0 %3244 }
0x19b5   :  { %4703 = vrcp.f32 %v3245_v49 }
0x19b8   :  { %v3248_v50 = vpop.xlane.xlu0 %3247 }
0x19b9   :  { %4705 = vrcp.f32 %v3248_v50 }
0x19bc   :  { %v3254_v51 = vpop.permute.xlu0 %3253 }
0x19bd   :  { %4521 = vmatpush3.msra.mxu0 %v3254_v51 }
0x19be   :  { %4530 = vmatprep.subr.mxu0 %v4102_v35 }
0x19c0   :  { %v3416_v1 = vpop.permute.xlu0 %3415 }
0x19c1   :  { %v3431_v3 = vsel %vm1591_vm4, %v3429_v2, %v3416_v1  ;;  %v4120_v1 = vld [vmem:[%s5576_s12 + $0x88] sm:$0xff]  ;;  %v4119_v2 = vld [vmem:[%s5576_s12 + $0x80] sm:$0xff] }
0x19c2   :  { %v4704_v52 = vpop.eup %4703 }
0x19c3   :  { %v3251_v53 = vmul.f32 %v4704_v52, %v4700_v46  ;;  %v4110_v46 = vld [vmem:[%s5573_s9 + $0x1] ss:$0 sm:$0xff]  ;;  %v4134_v52 = vld [vmem:[%s5576_s12 + $0xf8] sm:$0xff] }
0x19c5   :  { %4523 = vmatmul.mubr.msk.f32.vlgmr.msra.gmra.mxu0 %vm247_vm2, %v3251_v53  ;;  %v4133_v53 = vld [vmem:[%s5576_s12 + $0xf0] sm:$0xff] }
0x19c6   :  { %v4706_v54 = vpop.eup %4705  ;;  %4531 = vmatpush3.msra.mxu0 %v4102_v35  ;;  %v4130_v35 = vld [vmem:[%s5576_s12 + $0xd8] sm:$0xff] }
0x19c7   :  { %v3252_v33 = vmul.f32 %v4706_v54, %v4702_v47  ;;  %4532 = vmatprep.subr.mxu0 %v4101_v31  ;;  %v4132_v54 = vld [vmem:[%s5576_s12 + $0xe8] sm:$0xff] }
0x19c8   :  { %4533 = vmatpush3.msra.mxu0 %v4101_v31  ;;  %v4129_v31 = vld [vmem:[%s5576_s12 + $0xd0] sm:$0xff] }
0x19c9   :  { %4528 = vmatmul.mubr.msk.f32.vlgmr.msra.gmra.mxu1 %vm247_vm2, %v3252_v33  ;;  %4534 = vmatprep.subr.mxu0 %v4100_v55  ;;  %v4131_v33 = vld [vmem:[%s5576_s12 + $0xe0] sm:$0xff] }
0x19ca   :  { %4535 = vmatpush3.msra.mxu0 %v4100_v55  ;;  %v4128_v55 = vld [vmem:[%s5576_s12 + $0xc8] sm:$0xff] }
0x19cb   :  { %4536 = vmatprep.subr.mxu0 %v4099_v56 }
0x19cc   :  { %4537 = vmatpush3.msra.mxu0 %v4099_v56  ;;  %v4127_v56 = vld [vmem:[%s5576_s12 + $0xc0] sm:$0xff] }
0x19cd   :  { %4552 = vmatprep.subr.mxu0 %v4134_v52 }
0x1a85   :  { %v3325_v58 = vpop.f32.mrf.mxu0 }
0x1a86   :  { %3423 = vrot.lane.b32.xlu0 %v3325_v58, %s5620_s28  ;;  %v4126_v58 = vld [vmem:[%s5576_s12 + $0xb8] sm:$0xff] }
0x1a87   :  { %v4524_v59 = vpop.f32.mrf.mxu0 }
0x1a88   :  { %v4125_v59 = vld [vmem:[%s5576_s12 + $0xb0] sm:$0xff] }
0x1a89   :  { %v3401_v60 = vpop.f32.mrf.mxu1 }
0x1a8a   :  { %3425 = vrot.lane.b32.xlu1 %v3401_v60, %s5620_s28  ;;  %v4124_v60 = vld [vmem:[%s5576_s12 + $0xa8] sm:$0xff] }
0x1a8b   :  { %v4529_v62 = vpop.f32.mrf.mxu1 }
0x1a8c   :  { %v4123_v62 = vld [vmem:[%s5576_s12 + $0xa0] sm:$0xff] }
0x1af8   :  { %v3424_v4 = vpop.permute.xlu0 %3423 }
0x1af9   :  { %v3433_v5 = vsel %vm1594_vm3, %v3431_v3, %v3424_v4 }
0x1afa   :  { %4538 = vmatprep.mubr.msk.f32.mxu0 %vm70_vm0, %v3433_v5 }
0x1afc   :  { %v3426_v9 = vpop.permute.xlu1 %3425 }
0x1afd   :  { %v3434_v10 = vsel %vm1594_vm3, %v3432_v40, %v3426_v9 }
0x1afe   :  { %4539 = vmatmul.mubr.msk.f32.vlgmr.msra.gmra.mxu0 %vm70_vm0, %v3434_v10 }
0x1aff   :  { %4553 = vmatpush3.msra.mxu0 %v4134_v52 }
0x1b00   :  { %4554 = vmatprep.subr.mxu0 %v4133_v53 }
0x1b01   :  { %4555 = vmatpush3.msra.mxu0 %v4133_v53 }
0x1b02   :  { %4556 = vmatprep.subr.mxu0 %v4132_v54 }
0x1b03   :  { %4557 = vmatpush3.msra.mxu0 %v4132_v54 }
0x1b04   :  { %4558 = vmatprep.subr.mxu0 %v4131_v33 }
0x1b05   :  { %4559 = vmatpush3.msra.mxu0 %v4131_v33 }
0x1b06   :  { %4560 = vmatprep.subr.mxu0 %v4130_v35 }
0x1b07   :  { %4561 = vmatpush3.msra.mxu0 %v4130_v35 }
0x1b08   :  { %4562 = vmatprep.subr.mxu0 %v4129_v31 }
0x1b09   :  { %4563 = vmatpush3.msra.mxu0 %v4129_v31 }
0x1b0a   :  { %4564 = vmatprep.subr.mxu0 %v4128_v55 }
0x1b0b   :  { %4565 = vmatpush3.msra.mxu0 %v4128_v55  ;;  %v4139_v55 = vld [vmem:[%s5578_s14 + $0x1] ss:$0 sm:$0xff] }
0x1b0c   :  { %4566 = vmatprep.subr.mxu0 %v4127_v56 }
0x1b0d   :  { %4567 = vmatpush3.msra.mxu0 %v4127_v56 }
0x1b0e   :  { %4568 = vmatprep.subr.mxu0 %v4126_v58 }
0x1b0f   :  { %4569 = vmatpush3.msra.mxu0 %v4126_v58 }
0x1b10   :  { %4570 = vmatprep.subr.mxu0 %v4125_v59 }
0x1b11   :  { %4571 = vmatpush3.msra.mxu0 %v4125_v59  ;;  %v4140_v59 = vld [vmem:[%s5579_s15 + $0x1] ss:$0 sm:$0xff] }
0x1b12   :  { %4572 = vmatprep.subr.mxu0 %v4124_v60 }
0x1b13   :  { %4573 = vmatpush3.msra.mxu0 %v4124_v60 }
0x1b14   :  { %4574 = vmatprep.subr.mxu0 %v4123_v62 }
0x1b15   :  { %4575 = vmatpush3.msra.mxu0 %v4123_v62 }
0x1b16   :  { %4576 = vmatprep.subr.mxu0 %v4122_v63 }
0x1b17   :  { %4577 = vmatpush3.msra.mxu0 %v4122_v63 }
0x1b18   :  { %4578 = vmatprep.subr.mxu0 %v4121_v0 }
0x1b19   :  { %4579 = vmatpush3.msra.mxu0 %v4121_v0 }
0x1b1a   :  { %4580 = vmatprep.subr.mxu0 %v4120_v1 }
0x1b1b   :  { %4581 = vmatpush3.msra.mxu0 %v4120_v1 }
0x1b1c   :  { %4582 = vmatprep.subr.mxu0 %v4119_v2 }
0x1b1d   :  { %4583 = vmatpush3.msra.mxu0 %v4119_v2 }
0x1bbe   :  { %v4540_v11 = vpop.f32.mrf.mxu0 }
0x1bbf   :  { %v3526_v12 = vadd.f32 %v4540_v11, %v4104_v6 }
0x1bc0   :  { %v3520_v39 = vpop.f32.mrf.mxu0 }
0x1bc1   :  { %v3530_v13 = vadd.f32 %v3526_v12, %v5221_v27  ;;  %v3521_v14 = vadd.f32 %v4104_v6, %v3520_v39 }
0x1bc3   :  { %v3529_v15 = vadd.f32 %v3521_v14, %v5219_v25  ;;  %v3538_v8 = vsel %vm70_vm0, %v3530_v13, 0.0  ;;  %v4114_v25 = vld [vmem:[%s5574_s10 + $0x38] sm:$0xff] }
0x1bc4   :  { %3539 = vadd.xlane.f32.xlu1 %v3538_v8  ;;  %4541 = vmatprep.subr.mxu1 %v4114_v25 }
0x1bc5   :  { %v3535_v16 = vsel %vm70_vm0, %v3529_v15, 0.0  ;;  %4542 = vmatpush3.msra.mxu1 %v4114_v25 }
0x1bc6   :  { %3536 = vadd.xlane.f32.xlu0 %v3535_v16  ;;  %4543 = vmatprep.subr.mxu1 %v4113_v43 }
0x1bc7   :  { %4544 = vmatpush3.msra.mxu1 %v4113_v43 }
0x1bc8   :  { %4545 = vmatprep.subr.mxu1 %v4112_v29 }
0x1bc9   :  { %4546 = vmatpush3.msra.mxu1 %v4112_v29 }
0x1bca   :  { %4547 = vmatprep.subr.mxu1 %v4111_v32 }
0x1bcb   :  { %4548 = vmatpush3.msra.mxu1 %v4111_v32 }
0x1bcc   :  { %4587 = vmatprep.subr.mxu1 %v4743_v34 }
0x1c4d   :  { %v3540_v36 = vpop.xlane.xlu1 %3539 }
0x1c4e   :  { %v3542_v17 = vmul.f32 0.03125, %v3540_v36 }
0x1c4f   :  { %v3537_v18 = vpop.xlane.xlu0 %3536 }
0x1c50   :  { %v3541_v19 = vmul.f32 0.03125, %v3537_v18  ;;  %v3544_v20 = vsub.f32 %v3530_v13, %v3542_v17 }
0x1c52   :  { %v3543_v21 = vsub.f32 %v3529_v15, %v3541_v19  ;;  %v3546_v24 = vmul.f32 %v3544_v20, %v3544_v20 }
0x1c54   :  { %v3545_v22 = vmul.f32 %v3543_v21, %v3543_v21  ;;  %v3550_v27 = vsel %vm70_vm0, %v3546_v24, 0.0 }
0x1c56   :  { %v3547_v23 = vsel %vm70_vm0, %v3545_v22, 0.0  ;;  %v4136_v22 = vld [vmem:[%s5577_s13 + $0x1] ss:$0 sm:$0xff] }
0x1c57   :  { %3548 = vadd.xlane.f32.xlu0 %v3547_v23 }
0x1c5b   :  { %3551 = vadd.xlane.f32.xlu0 %v3550_v27 }
0x1ce0   :  { %v3549_v26 = vpop.xlane.xlu0 %3548 }
0x1ce1   :  { %v3553_v38 = vmul.f32 0.03125, %v3549_v26 }
0x1ce3   :  { %v3555_v57 = vadd.f32 1e-12, %v3553_v38 }
0x1ce4   :  { %v3552_v42 = vpop.xlane.xlu0 %3551 }
0x1ce5   :  { %4707 = vrsqrt.f32 %v3555_v57  ;;  %v3554_v44 = vmul.f32 0.03125, %v3552_v42 }
0x1ce7   :  { %v3556_v41 = vadd.f32 1e-12, %v3554_v44 }
0x1ce9   :  { %4709 = vrsqrt.f32 %v3556_v41 }
0x1cf2   :  { %v4708_v61 = vpop.eup %4707 }
0x1cf3   :  { %v3559_v45 = vmul.f32 %v4708_v61, %v3543_v21 }
0x1cf5   :  { %v3567_v30 = vmul.f32 %v4109_v28, %v3559_v45 }
0x1cf6   :  { %v4710_v47 = vpop.eup %4709 }
0x1cf7   :  { %v3560_v48 = vmul.f32 %v4710_v47, %v3544_v20  ;;  %v5444_v49 = vadd.f32 %v4110_v46, %v3567_v30  ;;  %v3845_v47 = vld [vmem:[%s5580_s16 + $0x18] sm:$0xff] }
0x1cf9   :  { %v3568_v50 = vmul.f32 %v4109_v28, %v3560_v48  ;;  %4549 = vmatprep.mubr.msk.f32.mxu1 %vm70_vm0, %v5444_v49  ;;  %v3844_v48 = vld [vmem:[%s5580_s16 + $0x10] sm:$0xff] }
0x1cfb   :  { %v5448_v51 = vadd.f32 %v4110_v46, %v3568_v50  ;;  %v3842_v50 = vld [vmem:[%s5580_s16] sm:$0xff] }
0x1cfd   :  { %4550 = vmatmul.mubr.msk.f32.vlgmr.msra.gmra.mxu1 %vm70_vm0, %v5448_v51 }
0x1cfe   :  { %4595 = vmatprep.mubr.msk.f32.mxu1 %vm4744_vm1, %v4743_v34  ;;  %4588 = vmatpush3.msra.mxu1 %v3845_v47 }
0x1cff   :  { %4589 = vmatprep.subr.mxu1 %v4743_v34 }
0x1d00   :  { %4590 = vmatpush3.msra.mxu1 %v3844_v48 }
0x1d01   :  { %4591 = vmatprep.subr.mxu1 %v4743_v34 }
0x1dbd   :  { %v4551_v3 = vpop.f32.mrf.mxu1 }
0x1dbe   :  { %v3668_v4 = vadd.f32 %v4551_v3, %v4116_v37  ;;  %v3930_v3 = vld [vmem:[%s5582_s18 + $0x18] sm:$0xff] }
0x1dbf   :  { %v3662_v5 = vpop.f32.mrf.mxu1 }
0x1dc0   :  { %v3674_v7 = vmul.f32 0.044715, %v3668_v4  ;;  %v3663_v40 = vadd.f32 %v4116_v37, %v3662_v5  ;;  %v3672_v19 = vmul.f32 0.5, %v3668_v4  ;;  %v3928_v5 = vld [vmem:[%s5582_s18 + $0x8] sm:$0xff] }
0x1dc2   :  { %v3676_v9 = vmul.f32 %v3674_v7, %v3668_v4  ;;  %v3673_v10 = vmul.f32 0.044715, %v3663_v40  ;;  %v3671_v17 = vmul.f32 0.5, %v3663_v40  ;;  %v3927_v7 = vld [vmem:[%s5582_s18] sm:$0xff] }
0x1dc4   :  { %v3678_v6 = vmul.f32 %v3676_v9, %v3668_v4  ;;  %v3675_v11 = vmul.f32 %v3673_v10, %v3663_v40 }
0x1dc6   :  { %v3680_v12 = vadd.f32 %v3678_v6, %v3668_v4  ;;  %v3677_v39 = vmul.f32 %v3675_v11, %v3663_v40  ;;  %v3929_v4 = vld [vmem:[%s5582_s18 + $0x10] sm:$0xff]  ;;  %s4760_s18 = smov [#allocation2]  }
0x1dc7   :  { %s4019_s0 = sshll.u32 %s4760_s18, 4  ;;  %s4020_s0 = int_to_ptr.vmem [resolvable:$true] %s4019_s0 }
0x1dc8   :  { %v3679_v13 = vadd.f32 %v3677_v39, %v3663_v40  ;;  %v3682_v14 = vmul.f32 0.7978846, %v3680_v12  ;;  %v4141_v40 = vld [vmem:[%s5581_s17] ss:$0 sm:$0xff]  ;;  %s4721_s17 = scalar_lea.vmem %s4020_s0, 32  ;;  %p4726_p1 = scmp.lt.s32.totalorder %s4020_s0, %s4020_s0 }
0x1dc9   :  { %v4143_v12 = vld [vmem:[%s5583_s19] ss:$0 sm:$0xff]  ;;  %p4722_p0 = scmp.ne.s32.totalorder %s4020_s0, %s4721_s17  ;;  %p4727_p2 = scmp.lt.s32.totalorder %s4721_s17, %s4721_s17 }
0x1dca   :  { %v3681_v15 = vmul.f32 0.7978846, %v3679_v13  ;;  %4711 = vtanh.f32 %v3682_v14 }
0x1dcb   :  { %p4728_p3 = por %p4727_p2, %p4726_p1 }
0x1dcc   :  { %4713 = vtanh.f32 %v3681_v15 }
0x1dcd   :  { %p4729_p4 = pnand %p4728_p3, %p4722_p0 }
0x1dd7   :  { %v4712_v8 = vpop.eup %4711 }
0x1dd8   :  { %v3686_v36 = vadd.f32 1.0, %v4712_v8 }
0x1dd9   :  { %v4714_v16 = vpop.eup %4713 }
0x1dda   :  { %v3685_v18 = vadd.f32 1.0, %v4714_v16  ;;  %v3688_v21 = vmul.f32 %v3686_v36, %v3672_v19 }
0x1ddc   :  { %v3687_v20 = vmul.f32 %v3685_v18, %v3671_v17 }
0x1dde   :  { %4584 = vmatprep.mubr.f32.mxu0 %v3687_v20 }
0x1ddf   :  { %4585 = vmatmul.mubr.f32.vlgmr.msra.gmra.mxu0 %v3688_v21 }
0x1e9f   :  { %v4586_v23 = vpop.f32.mrf.mxu0 }
0x1ea0   :  { %v3786_v24 = vadd.f32 %v4586_v23, %v4136_v22 }
0x1ea1   :  { %v3780_v27 = vpop.f32.mrf.mxu0 }
0x1ea2   :  { %v3790_v25 = vadd.f32 %v3786_v24, %v5448_v51  ;;  %v3781_v43 = vadd.f32 %v4136_v22, %v3780_v27 }
0x1ea4   :  { %v3789_v29 = vadd.f32 %v3781_v43, %v5444_v49  ;;  %v3798_v32 = vsel %vm70_vm0, %v3790_v25, 0.0  ;;  %v3843_v49 = vld [vmem:[%s5580_s16 + $0x8] sm:$0xff] }
0x1ea5   :  { %3799 = vadd.xlane.f32.xlu0 %v3798_v32  ;;  %4592 = vmatpush3.msra.mxu1 %v3843_v49 }
0x1ea6   :  { %v3795_v26 = vsel %vm70_vm0, %v3789_v29, 0.0  ;;  %4593 = vmatprep.subr.mxu1 %v4743_v34 }
0x1ea7   :  { %3796 = vadd.xlane.f32.xlu1 %v3795_v26  ;;  %4594 = vmatpush3.msra.mxu1 %v3842_v50 }
0x1ea8   :  { %4598 = vmatprep.subr.mxu1 %v4743_v34 }
0x1f2e   :  { %v3800_v38 = vpop.xlane.xlu0 %3799 }
0x1f2f   :  { %v3802_v57 = vmul.f32 0.03125, %v3800_v38 }
0x1f30   :  { %v3797_v42 = vpop.xlane.xlu1 %3796 }
0x1f31   :  { %v3804_v44 = vsub.f32 %v3790_v25, %v3802_v57  ;;  %v3801_v41 = vmul.f32 0.03125, %v3797_v42 }
0x1f33   :  { %v3803_v61 = vsub.f32 %v3789_v29, %v3801_v41  ;;  %v3806_v28 = vmul.f32 %v3804_v44, %v3804_v44 }
0x1f35   :  { %v3810_v45 = vsel %vm70_vm0, %v3806_v28, 0.0  ;;  %v3805_v46 = vmul.f32 %v3803_v61, %v3803_v61 }
0x1f36   :  { %3811 = vadd.xlane.f32.xlu0 %v3810_v45 }
0x1f37   :  { %v3807_v30 = vsel %vm70_vm0, %v3805_v46, 0.0 }
0x1f38   :  { %3808 = vadd.xlane.f32.xlu1 %v3807_v30 }
0x1fbf   :  { %v3812_v51 = vpop.xlane.xlu0 %3811 }
0x1fc0   :  { %v3814_v52 = vmul.f32 0.03125, %v3812_v51 }
0x1fc1   :  { %v3809_v53 = vpop.xlane.xlu1 %3808 }
0x1fc2   :  { %v3816_v54 = vadd.f32 1e-12, %v3814_v52  ;;  %v3813_v33 = vmul.f32 0.03125, %v3809_v53 }
0x1fc4   :  { %4715 = vrsqrt.f32 %v3816_v54  ;;  %v3815_v35 = vadd.f32 1e-12, %v3813_v33 }
0x1fc6   :  { %4717 = vrsqrt.f32 %v3815_v35 }
0x1fd1   :  { %v4716_v31 = vpop.eup %4715 }
0x1fd2   :  { %v3820_v56 = vmul.f32 %v4716_v31, %v3804_v44 }
0x1fd3   :  { %v4718_v58 = vpop.eup %4717 }
0x1fd4   :  { %v3819_v60 = vmul.f32 %v4718_v58, %v3803_v61  ;;  %v3828_v62 = vmul.f32 %v4139_v55, %v3820_v56 }
0x1fd6   :  { %v3827_v63 = vmul.f32 %v4139_v55, %v3819_v60  ;;  %v3836_v0 = vadd.f32 %v4140_v59, %v3828_v62 }
0x1fd8   :  { %v3835_v1 = vadd.f32 %v4140_v59, %v3827_v63  ;;  %v3838_v2 = vrot.slane %v3836_v0, 7 }
0x1fda   :  { %v3841_v37 = vsel %vm3840_vm5, %v3835_v1, %v3838_v2 }
0x1fdb   :  { %4596 = vmatmul.mubr.msk.f32.vlgmr.msra.gmra.mxu1 %vm70_vm0, %v3841_v37 }
0x1fdc   :  { %4606 = vmatprep.mubr.msk.f32.mxu1 %vm4744_vm1, %v4743_v34  ;;  %4599 = vmatpush3.msra.mxu1 %v3930_v3 }
0x1fdd   :  { %4600 = vmatprep.subr.mxu1 %v4743_v34 }
0x1fde   :  { %4601 = vmatpush3.msra.mxu1 %v3929_v4 }
0x1fdf   :  { %4602 = vmatprep.subr.mxu1 %v4743_v34 }
0x1fe0   :  { %4603 = vmatpush3.msra.mxu1 %v3928_v5 }
0x1fe1   :  { %4604 = vmatprep.subr.mxu1 %v4743_v34 }
0x1fe2   :  { %4605 = vmatpush3.msra.mxu1 %v3927_v7 }
0x209b   :  { %v3922_v9 = vpop.f32.mrf.mxu1 }
0x209c   :  { %v3923_v10 = vadd.f32 %v4141_v40, %v3922_v9 }
0x209d   :  { %v4597_v6 = vpop.f32.mrf.mxu1 }
0x209e   :  { %4719 = vtanh.f32 %v3923_v10 }
0x20ab   :  { %v4720_v11 = vpop.eup %4719 }
0x20ac   :  { %4607 = vmatmul.mubr.msk.f32.vlgmr.msra.gmra.mxu1 %vm70_vm0, %v4720_v11 }
0x216c   :  { %v4007_v39 = vpop.f32.mrf.mxu1 }
0x216d   :  { %v4008_v34 = vadd.f32 %v4143_v12, %v4007_v39 }
0x216e   :  { %v4608_v13 = vpop.f32.mrf.mxu1 }
0x216f   :  { %4012 = vst.msk [vmem:[#allocation2] sm:$0x3] %vm4011_vm6, %v4008_v34 }
0x2170   :  { %4732 = shalt.err (!%p4729_p4)
}
0x2171   :  { %4022 = dma.vmem_to_hbm [thread:$0]  %s4020_s0, 32, %s5584_s20, [#allocation3]  }
0x2172   :  { %4741 = dma.done.wait [#allocation3], 32  }
0x2173   :  { %4742 = vsyncadd [#allocation3], 4294967264 }
0x2174   :  { %4026 = vsyncpa [#allocation3], 1 }

</bundles_post_ra>
